<compile_context>
chip_gen: v7x
topology: tpu7x:2x2x1
jax: 0.10.0
libtpu: 0.0.40
codegen_flags: <defaults>
</compile_context>

<pallas_src>
import functools

import jax
import jax.numpy as jnp
from jax.experimental import pallas as pl
from jax.experimental.pallas import tpu as pltpu


# ----------------------------------------------------------------------------
# Pallas kernels
# ----------------------------------------------------------------------------
def conv1x1_bn_relu_kernel(x_ref, w_ref, sc_ref, sh_ref, o_ref):
    """One batch element of: out = relu((X @ W) * scale + shift).

    x: (P, Cin) bf16, w: (Cin, Cout) bf16, scale/shift: (1, Cout) f32.
    """
    acc = jnp.dot(x_ref[...], w_ref[...], preferred_element_type=jnp.float32)
    y = jnp.maximum(acc * sc_ref[...] + sh_ref[...], 0.0)
    o_ref[...] = y.astype(o_ref.dtype)


def disc_tail_kernel(v_ref, x_ref, w2a_ref, w2b_ref, sc_ref, sh_ref,
                     w3_ref, b3_ref, o_ref, *, inv_p):
    """One batch element of the fused discriminator tail.

    K-split of the channel concat (v is identical at every spatial position):
        y      = relu((v_flat @ W2a + X @ W2b) * scale2 + shift2)   # (P, 512)
        pooled = mean over P of y                                   # (1, 512)
        out    = sigmoid(sum(pooled * w3) + b3)                     # (1, 1)
    """
    v_c = jnp.dot(v_ref[...], w2a_ref[...],
                  preferred_element_type=jnp.float32)                 # (1, C)
    x_c = jnp.dot(x_ref[...], w2b_ref[...],
                  preferred_element_type=jnp.float32)                 # (P, C)
    y = jnp.maximum((x_c + v_c) * sc_ref[...] + sh_ref[...], 0.0)     # (P, C)
    pooled = jnp.sum(y, axis=0, keepdims=True) * inv_p                # (1, C)
    logit = jnp.sum(pooled * w3_ref[...], axis=-1, keepdims=True) \
        + b3_ref[...]                                                 # (1, 1)
    o_ref[...] = jax.nn.sigmoid(logit)


# ----------------------------------------------------------------------------
# pallas_call wrappers
# ----------------------------------------------------------------------------
def conv1x1_bn_relu(x, w, scale, shift):
    """x: (B, P, Cin) bf16 -> (B, P, Cout) bf16  (1x1 conv + folded BN + ReLU)."""
    B, P, Cin = x.shape
    Cout = w.shape[1]
    return pl.pallas_call(
        conv1x1_bn_relu_kernel,
        out_shape=jax.ShapeDtypeStruct((B, P, Cout), jnp.bfloat16),
        grid=(B,),
        in_specs=[
            pl.BlockSpec((None, P, Cin), lambda b: (b, 0, 0)),
            pl.BlockSpec((Cin, Cout), lambda b: (0, 0)),
            pl.BlockSpec((1, Cout), lambda b: (0, 0)),
            pl.BlockSpec((1, Cout), lambda b: (0, 0)),
        ],
        out_specs=pl.BlockSpec((None, P, Cout), lambda b: (b, 0, 0)),
        compiler_params=pltpu.CompilerParams(
            dimension_semantics=("parallel",)),
    )(x, w, scale, shift)


def disc_tail(v_flat, x, w2a, w2b, scale2, shift2, w3, b3):
    """Fused conv1x11 (K-split) + BN + ReLU + avg-pool + Linear + sigmoid."""
    B, P, Cin = x.shape
    Kv = v_flat.shape[-1]
    C = w2b.shape[1]
    return pl.pallas_call(
        functools.partial(disc_tail_kernel, inv_p=1.0 / P),
        out_shape=jax.ShapeDtypeStruct((B, 1, 1), jnp.float32),
        grid=(B,),
        in_specs=[
            pl.BlockSpec((None, 1, Kv), lambda b: (b, 0, 0)),   # v_flat
            pl.BlockSpec((None, P, Cin), lambda b: (b, 0, 0)),  # input pixels
            pl.BlockSpec((Kv, C), lambda b: (0, 0)),            # W2a (visual rows)
            pl.BlockSpec((Cin, C), lambda b: (0, 0)),           # W2b (input rows)
            pl.BlockSpec((1, C), lambda b: (0, 0)),             # scale2
            pl.BlockSpec((1, C), lambda b: (0, 0)),             # shift2
            pl.BlockSpec((1, C), lambda b: (0, 0)),             # w3 (row vector)
            pl.BlockSpec((1, 1), lambda b: (0, 0)),             # b3
        ],
        out_specs=pl.BlockSpec((None, 1, 1), lambda b: (b, 0, 0)),
        compiler_params=pltpu.CompilerParams(
            dimension_semantics=("parallel",)),
    )(v_flat, x, w2a, w2b, scale2, shift2, w3, b3)


# ----------------------------------------------------------------------------
# Parameters (deterministic, synthetic) -- layout transforms done once here.
# ----------------------------------------------------------------------------
def make_params(key, ndf=512):
    ks = jax.random.split(key, 14)
    raw = {}
    # conv1x1: Conv2d(512 -> 8, k=1, bias) + BN(8) + ReLU
    raw["w1"] = 0.05 * jax.random.normal(ks[0], (8, 512), jnp.float32)   # (Cout, Cin)
    raw["b1"] = 0.05 * jax.random.normal(ks[1], (8,), jnp.float32)
    raw["g1"] = 1.0 + 0.1 * jax.random.normal(ks[2], (8,), jnp.float32)
    raw["be1"] = 0.1 * jax.random.normal(ks[3], (8,), jnp.float32)
    raw["mu1"] = 0.1 * jax.random.normal(ks[4], (8,), jnp.float32)
    raw["var1"] = 1.0 + 0.1 * jnp.abs(jax.random.normal(ks[5], (8,), jnp.float32))
    # conv1x11: Conv2d(1296 -> 512, k=1, bias) + BN(512) + ReLU
    raw["w2"] = 0.02 * jax.random.normal(ks[6], (ndf, 1296), jnp.float32)
    raw["b2"] = 0.02 * jax.random.normal(ks[7], (ndf,), jnp.float32)
    raw["g2"] = 1.0 + 0.1 * jax.random.normal(ks[8], (ndf,), jnp.float32)
    raw["be2"] = 0.1 * jax.random.normal(ks[9], (ndf,), jnp.float32)
    raw["mu2"] = 0.1 * jax.random.normal(ks[10], (ndf,), jnp.float32)
    raw["var2"] = 1.0 + 0.1 * jnp.abs(jax.random.normal(ks[11], (ndf,), jnp.float32))
    # disc_linear: Linear(512 -> 1)
    raw["w3"] = 0.05 * jax.random.normal(ks[12], (1, ndf), jnp.float32)
    raw["b3"] = 0.05 * jax.random.normal(ks[13], (1,), jnp.float32)

    eps = 1e-5
    s1 = raw["g1"] / jnp.sqrt(raw["var1"] + eps)
    sh1 = (raw["b1"] - raw["mu1"]) * s1 + raw["be1"]      # BN(conv + bias) folded
    s2 = raw["g2"] / jnp.sqrt(raw["var2"] + eps)
    sh2 = (raw["b2"] - raw["mu2"]) * s2 + raw["be2"]

    # conv1x11 as matmul: rows 0..783 multiply the PyTorch (C,H,W)-flattened visual
    # vector (index c*98 + hw); our kernel produces the visual activation in
    # (hw, c) row-major order, so permute those weight rows once here.
    n_c1, pv = 8, 7 * 14                                   # conv1x1 out channels, 7*14 pixels
    w2_mm = raw["w2"].T                                    # (1296, 512)
    w2a = (w2_mm[:n_c1 * pv]
           .reshape(n_c1, pv, ndf)
           .transpose(1, 0, 2)
           .reshape(n_c1 * pv, ndf))                       # row index = hw*8 + c
    w2b = w2_mm[n_c1 * pv:]                                # (512, 512) input-channel rows

    params = {
        "w1": raw["w1"].T.astype(jnp.bfloat16),            # (512, 8)
        "scale1": s1.reshape(1, -1),
        "shift1": sh1.reshape(1, -1),
        "w2a": w2a.astype(jnp.bfloat16),                   # (784, 512)
        "w2b": w2b.astype(jnp.bfloat16),                   # (512, 512)
        "scale2": s2.reshape(1, -1),
        "shift2": sh2.reshape(1, -1),
        "w3": raw["w3"].astype(jnp.float32),               # (1, 512)
        "b3": raw["b3"].reshape(1, 1),
    }
    return params, raw


# ----------------------------------------------------------------------------
# netD3 forward
# ----------------------------------------------------------------------------
def netd3_forward(params, inp, v):
    """inp: (B, 512, 8, 2) NCHW, v: (B, 512, 7, 14) NCHW -> (B, 1)."""
    B, Cv, Hv, Wv = v.shape
    _, Ci, Hi, Wi = inp.shape
    Pv, Pi = Hv * Wv, Hi * Wi

    # visual branch: 1x1 conv + BN + ReLU (per-pixel matmul on the MXU)
    v_nhwc = jnp.transpose(v, (0, 2, 3, 1)).reshape(B, Pv, Cv).astype(jnp.bfloat16)
    v1 = conv1x1_bn_relu(v_nhwc, params["w1"], params["scale1"],
                         params["shift1"])                           # (B, 98, 8) bf16

    # PyTorch's v.view(B,-1,1,1) uses (C,H,W) flatten order; the matching row
    # permutation was pre-applied to w2a, so a plain row-major flatten suffices.
    v_flat = v1.reshape(B, 1, Pv * v1.shape[-1])                     # (B, 1, 784)

    # discriminator tail: cat(v_tiled, input) -> conv1x11 -> BN -> ReLU ->
    # adaptive_avg_pool2d -> Linear -> sigmoid, all fused (concat via K-split).
    x_nhwc = jnp.transpose(inp, (0, 2, 3, 1)).reshape(B, Pi, Ci).astype(jnp.bfloat16)
    s = disc_tail(v_flat, x_nhwc, params["w2a"], params["w2b"],
                  params["scale2"], params["shift2"], params["w3"], params["b3"])
    return s.reshape(B, 1)


# ----------------------------------------------------------------------------
# Pure-JAX reference (mirrors the PyTorch module, f32, eval-mode BN)
# ----------------------------------------------------------------------------
def reference_forward(raw, inp, v, eps=1e-5):
    def bn(x, g, b, mu, var):
        return ((x - mu[None, :, None, None])
                / jnp.sqrt(var[None, :, None, None] + eps)
                * g[None, :, None, None] + b[None, :, None, None])

    v1 = jnp.einsum("bchw,oc->bohw", v, raw["w1"]) + raw["b1"][None, :, None, None]
    v1 = jax.nn.relu(bn(v1, raw["g1"], raw["be1"], raw["mu1"], raw["var1"]))
    B = v.shape[0]
    vf = jnp.tile(v1.reshape(B, -1, 1, 1), (1, 1, inp.shape[2], inp.shape[3]))
    xc = jnp.concatenate([vf, inp], axis=1)
    x = jnp.einsum("bchw,oc->bohw", xc, raw["w2"]) + raw["b2"][None, :, None, None]
    x = jax.nn.relu(bn(x, raw["g2"], raw["be2"], raw["mu2"], raw["var2"]))
    pooled = jnp.mean(x, axis=(2, 3))
    return jax.nn.sigmoid(pooled @ raw["w3"].T + raw["b3"][None, :])


# ----------------------------------------------------------------------------
if __name__ == "__main__":
    key = jax.random.PRNGKey(0)
    k_param, k_inp, k_v = jax.random.split(key, 3)

    params, raw = make_params(k_param)

    B = 2
    inp = jax.random.normal(k_inp, (B, 512, 8, 2), jnp.float32)   # spatial must be (8,2)
    v = jax.random.normal(k_v, (B, 512, 7, 14), jnp.float32)      # 8*7*14 + 512 = 1296

    fwd = jax.jit(netd3_forward)
    out = fwd(params, inp, v)
    jax.block_until_ready(out)

    assert out.shape == (B, 1)
    assert bool(jnp.all(jnp.isfinite(out)))

    ref = reference_forward(raw, inp, v)
    assert bool(jnp.allclose(out, ref, atol=3e-2)), (out, ref)

    print("KERNEL_OK")
</pallas_src>

<mosaic_0001>
module attributes {stable_mosaic.version = 11 : i64} {
  func.func @conv1x1_bn_relu_kernel(%arg0: i32, %arg1: memref<1x98x512xbf16, #tpu.memory_space<vmem>>, %arg2: memref<512x8xbf16, #tpu.memory_space<vmem>>, %arg3: memref<1x8xf32, #tpu.memory_space<vmem>>, %arg4: memref<1x8xf32, #tpu.memory_space<vmem>>, %arg5: memref<1x98x8xbf16, #tpu.memory_space<vmem>>) attributes {dimension_semantics = [#tpu.dimension_semantics<parallel>], iteration_bounds = array<i64: 2>, scalar_prefetch = 0 : i64, scratch_operands = 0 : i64, tpu.core_type = #tpu.core_type<tc>, window_params = [{transform_indices = @transform_0, window_bounds = array<i64: 1, 98, 512>}, {pipeline_mode = #tpu.pipeline_mode<synchronous>, transform_indices = @transform_1, window_bounds = array<i64: 512, 8>}, {pipeline_mode = #tpu.pipeline_mode<synchronous>, transform_indices = @transform_2, window_bounds = array<i64: 1, 8>}, {pipeline_mode = #tpu.pipeline_mode<synchronous>, transform_indices = @transform_3, window_bounds = array<i64: 1, 8>}, {transform_indices = @transform_4, window_bounds = array<i64: 1, 98, 8>}]} {
    %c0 = arith.constant 0 : index
    %c0_0 = arith.constant 0 : index
    %c0_1 = arith.constant 0 : index
    %0 = vector.load %arg1[%c0, %c0_0, %c0_1] : memref<1x98x512xbf16, #tpu.memory_space<vmem>>, vector<1x98x512xbf16>
    %1 = vector.shape_cast %0 : vector<1x98x512xbf16> to vector<98x512xbf16>
    %c0_2 = arith.constant 0 : index
    %c0_3 = arith.constant 0 : index
    %2 = vector.load %arg2[%c0_2, %c0_3] : memref<512x8xbf16, #tpu.memory_space<vmem>>, vector<512x8xbf16>
    %cst = arith.constant dense<0.000000e+00> : vector<98x8xf32>
    %3 = tpu.matmul %1, %2, %cst {dimension_numbers = #tpu.dot_dimension_numbers<[1], [0], [0], [1], [0, 0, 1, 1], [], []>} : vector<98x512xbf16>, vector<512x8xbf16>, vector<98x8xf32> -> vector<98x8xf32>
    %c0_4 = arith.constant 0 : index
    %c0_5 = arith.constant 0 : index
    %4 = vector.load %arg3[%c0_4, %c0_5] : memref<1x8xf32, #tpu.memory_space<vmem>>, vector<1x8xf32>
    %5 = vector.broadcast %4 : vector<1x8xf32> to vector<98x8xf32>
    %6 = arith.mulf %3, %5 : vector<98x8xf32>
    %c0_6 = arith.constant 0 : index
    %c0_7 = arith.constant 0 : index
    %7 = vector.load %arg4[%c0_6, %c0_7] : memref<1x8xf32, #tpu.memory_space<vmem>>, vector<1x8xf32>
    %8 = vector.broadcast %7 : vector<1x8xf32> to vector<98x8xf32>
    %9 = arith.addf %6, %8 : vector<98x8xf32>
    %cst_8 = arith.constant 0.000000e+00 : f32
    %10 = vector.broadcast %cst_8 : f32 to vector<98x8xf32>
    %11 = arith.maximumf %9, %10 : vector<98x8xf32>
    %12 = arith.truncf %11 : vector<98x8xf32> to vector<98x8xbf16>
    %c0_9 = arith.constant 0 : index
    %c0_10 = arith.constant 0 : index
    %c0_11 = arith.constant 0 : index
    %13 = vector.load %arg5[%c0_9, %c0_10, %c0_11] : memref<1x98x8xbf16, #tpu.memory_space<vmem>>, vector<1x98x8xbf16>
    %14 = vector.shape_cast %13 : vector<1x98x8xbf16> to vector<98x8xbf16>
    %15 = vector.shape_cast %12 : vector<98x8xbf16> to vector<1x98x8xbf16>
    tpu.vector_store %arg5[%c0_9, %c0_10, %c0_11], %15 {strides = array<i32>} : memref<1x98x8xbf16, #tpu.memory_space<vmem>>, vector<1x98x8xbf16>,
    return
  }
  func.func @transform_0(%arg0: i32) -> (i32, i32, i32) {
    %c0_i32 = arith.constant 0 : i32
    %c0_i32_0 = arith.constant 0 : i32
    %c0_i32_1 = arith.constant 0 : i32
    return %arg0, %c0_i32, %c0_i32_0 : i32, i32, i32
  }
  func.func @transform_1(%arg0: i32) -> (i32, i32) {
    %c0_i32 = arith.constant 0 : i32
    %c0_i32_0 = arith.constant 0 : i32
    %c0_i32_1 = arith.constant 0 : i32
    return %c0_i32, %c0_i32_0 : i32, i32
  }
  func.func @transform_2(%arg0: i32) -> (i32, i32) {
    %c0_i32 = arith.constant 0 : i32
    %c0_i32_0 = arith.constant 0 : i32
    %c0_i32_1 = arith.constant 0 : i32
    return %c0_i32, %c0_i32_0 : i32, i32
  }
  func.func @transform_3(%arg0: i32) -> (i32, i32) {
    %c0_i32 = arith.constant 0 : i32
    %c0_i32_0 = arith.constant 0 : i32
    %c0_i32_1 = arith.constant 0 : i32
    return %c0_i32, %c0_i32_0 : i32, i32
  }
  func.func @transform_4(%arg0: i32) -> (i32, i32, i32) {
    %c0_i32 = arith.constant 0 : i32
    %c0_i32_0 = arith.constant 0 : i32
    %c0_i32_1 = arith.constant 0 : i32
    return %arg0, %c0_i32, %c0_i32_0 : i32, i32, i32
  }
}

module attributes {stable_mosaic.version = 11 : i64} {
  func.func @disc_tail_kernel(%arg0: i32, %arg1: memref<1x1x784xbf16, #tpu.memory_space<vmem>>, %arg2: memref<1x16x512xbf16, #tpu.memory_space<vmem>>, %arg3: memref<784x512xbf16, #tpu.memory_space<vmem>>, %arg4: memref<512x512xbf16, #tpu.memory_space<vmem>>, %arg5: memref<1x512xf32, #tpu.memory_space<vmem>>, %arg6: memref<1x512xf32, #tpu.memory_space<vmem>>, %arg7: memref<1x512xf32, #tpu.memory_space<vmem>>, %arg8: memref<1x1xf32, #tpu.memory_space<vmem>>, %arg9: memref<1x1x1xf32, #tpu.memory_space<vmem>>) attributes {dimension_semantics = [#tpu.dimension_semantics<parallel>], iteration_bounds = array<i64: 2>, scalar_prefetch = 0 : i64, scratch_operands = 0 : i64, tpu.core_type = #tpu.core_type<tc>, window_params = [{transform_indices = @transform_0, window_bounds = array<i64: 1, 1, 784>}, {transform_indices = @transform_1, window_bounds = array<i64: 1, 16, 512>}, {pipeline_mode = #tpu.pipeline_mode<synchronous>, transform_indices = @transform_2, window_bounds = array<i64: 784, 512>}, {pipeline_mode = #tpu.pipeline_mode<synchronous>, transform_indices = @transform_3, window_bounds = array<i64: 512, 512>}, {pipeline_mode = #tpu.pipeline_mode<synchronous>, transform_indices = @transform_4, window_bounds = array<i64: 1, 512>}, {pipeline_mode = #tpu.pipeline_mode<synchronous>, transform_indices = @transform_5, window_bounds = array<i64: 1, 512>}, {pipeline_mode = #tpu.pipeline_mode<synchronous>, transform_indices = @transform_6, window_bounds = array<i64: 1, 512>}, {pipeline_mode = #tpu.pipeline_mode<synchronous>, transform_indices = @transform_7, window_bounds = array<i64: 1, 1>}, {transform_indices = @transform_8, window_bounds = array<i64: 1, 1, 1>}]} {
    %c0 = arith.constant 0 : index
    %c0_0 = arith.constant 0 : index
    %c0_1 = arith.constant 0 : index
    %0 = vector.load %arg1[%c0, %c0_0, %c0_1] : memref<1x1x784xbf16, #tpu.memory_space<vmem>>, vector<1x1x784xbf16>
    %1 = vector.shape_cast %0 : vector<1x1x784xbf16> to vector<1x784xbf16>
    %c0_2 = arith.constant 0 : index
    %c0_3 = arith.constant 0 : index
    %2 = vector.load %arg3[%c0_2, %c0_3] : memref<784x512xbf16, #tpu.memory_space<vmem>>, vector<784x512xbf16>
    %cst = arith.constant dense<0.000000e+00> : vector<1x512xf32>
    %3 = tpu.matmul %1, %2, %cst {dimension_numbers = #tpu.dot_dimension_numbers<[1], [0], [0], [1], [0, 0, 1, 1], [], []>} : vector<1x784xbf16>, vector<784x512xbf16>, vector<1x512xf32> -> vector<1x512xf32>
    %c0_4 = arith.constant 0 : index
    %c0_5 = arith.constant 0 : index
    %c0_6 = arith.constant 0 : index
    %4 = vector.load %arg2[%c0_4, %c0_5, %c0_6] : memref<1x16x512xbf16, #tpu.memory_space<vmem>>, vector<1x16x512xbf16>
    %5 = vector.shape_cast %4 : vector<1x16x512xbf16> to vector<16x512xbf16>
    %c0_7 = arith.constant 0 : index
    %c0_8 = arith.constant 0 : index
    %6 = vector.load %arg4[%c0_7, %c0_8] : memref<512x512xbf16, #tpu.memory_space<vmem>>, vector<512x512xbf16>
    %cst_9 = arith.constant dense<0.000000e+00> : vector<16x512xf32>
    %7 = tpu.matmul %5, %6, %cst_9 {dimension_numbers = #tpu.dot_dimension_numbers<[1], [0], [0], [1], [0, 0, 1, 1], [], []>} : vector<16x512xbf16>, vector<512x512xbf16>, vector<16x512xf32> -> vector<16x512xf32>
    %8 = vector.broadcast %3 : vector<1x512xf32> to vector<16x512xf32>
    %9 = arith.addf %7, %8 : vector<16x512xf32>
    %c0_10 = arith.constant 0 : index
    %c0_11 = arith.constant 0 : index
    %10 = vector.load %arg5[%c0_10, %c0_11] : memref<1x512xf32, #tpu.memory_space<vmem>>, vector<1x512xf32>
    %11 = vector.broadcast %10 : vector<1x512xf32> to vector<16x512xf32>
    %12 = arith.mulf %9, %11 : vector<16x512xf32>
    %c0_12 = arith.constant 0 : index
    %c0_13 = arith.constant 0 : index
    %13 = vector.load %arg6[%c0_12, %c0_13] : memref<1x512xf32, #tpu.memory_space<vmem>>, vector<1x512xf32>
    %14 = vector.broadcast %13 : vector<1x512xf32> to vector<16x512xf32>
    %15 = arith.addf %12, %14 : vector<16x512xf32>
    %cst_14 = arith.constant 0.000000e+00 : f32
    %16 = vector.broadcast %cst_14 : f32 to vector<16x512xf32>
    %17 = arith.maximumf %15, %16 : vector<16x512xf32>
    %cst_15 = arith.constant dense<0.000000e+00> : vector<512xf32>
    %18 = vector.multi_reduction <add>, %17, %cst_15 [0] : vector<16x512xf32> to vector<512xf32>
    %19 = vector.shape_cast %18 : vector<512xf32> to vector<1x512xf32>
    %cst_16 = arith.constant 6.250000e-02 : f32
    %20 = vector.broadcast %cst_16 : f32 to vector<1x512xf32>
    %21 = arith.mulf %19, %20 : vector<1x512xf32>
    %c0_17 = arith.constant 0 : index
    %c0_18 = arith.constant 0 : index
    %22 = vector.load %arg7[%c0_17, %c0_18] : memref<1x512xf32, #tpu.memory_space<vmem>>, vector<1x512xf32>
    %23 = arith.mulf %21, %22 : vector<1x512xf32>
    %cst_19 = arith.constant dense<0.000000e+00> : vector<1xf32>
    %24 = vector.multi_reduction <add>, %23, %cst_19 [1] : vector<1x512xf32> to vector<1xf32>
    %25 = vector.shape_cast %24 : vector<1xf32> to vector<1x1xf32>
    %c0_20 = arith.constant 0 : index
    %c0_21 = arith.constant 0 : index
    %26 = vector.load %arg8[%c0_20, %c0_21] : memref<1x1xf32, #tpu.memory_space<vmem>>, vector<1x1xf32>
    %27 = arith.addf %25, %26 : vector<1x1xf32>
    %28 = arith.negf %27 : vector<1x1xf32>
    %29 = math.exp %28 : vector<1x1xf32>
    %cst_22 = arith.constant 1.000000e+00 : f32
    %30 = vector.broadcast %cst_22 : f32 to vector<1x1xf32>
    %31 = arith.addf %30, %29 : vector<1x1xf32>
    %32 = arith.divf %30, %31 : vector<1x1xf32>
    %c0_23 = arith.constant 0 : index
    %c0_24 = arith.constant 0 : index
    %c0_25 = arith.constant 0 : index
    %33 = vector.load %arg9[%c0_23, %c0_24, %c0_25] : memref<1x1x1xf32, #tpu.memory_space<vmem>>, vector<1x1x1xf32>
    %34 = vector.shape_cast %33 : vector<1x1x1xf32> to vector<1x1xf32>
    %35 = vector.shape_cast %32 : vector<1x1xf32> to vector<1x1x1xf32>
    tpu.vector_store %arg9[%c0_23, %c0_24, %c0_25], %35 {strides = array<i32>} : memref<1x1x1xf32, #tpu.memory_space<vmem>>, vector<1x1x1xf32>,
    return
  }
  func.func @transform_0(%arg0: i32) -> (i32, i32, i32) {
    %c0_i32 = arith.constant 0 : i32
    %c0_i32_0 = arith.constant 0 : i32
    %c0_i32_1 = arith.constant 0 : i32
    return %arg0, %c0_i32, %c0_i32_0 : i32, i32, i32
  }
  func.func @transform_1(%arg0: i32) -> (i32, i32, i32) {
    %c0_i32 = arith.constant 0 : i32
    %c0_i32_0 = arith.constant 0 : i32
    %c0_i32_1 = arith.constant 0 : i32
    return %arg0, %c0_i32, %c0_i32_0 : i32, i32, i32
  }
  func.func @transform_2(%arg0: i32) -> (i32, i32) {
    %c0_i32 = arith.constant 0 : i32
    %c0_i32_0 = arith.constant 0 : i32
    %c0_i32_1 = arith.constant 0 : i32
    return %c0_i32, %c0_i32_0 : i32, i32
  }
  func.func @transform_3(%arg0: i32) -> (i32, i32) {
    %c0_i32 = arith.constant 0 : i32
    %c0_i32_0 = arith.constant 0 : i32
    %c0_i32_1 = arith.constant 0 : i32
    return %c0_i32, %c0_i32_0 : i32, i32
  }
  func.func @transform_4(%arg0: i32) -> (i32, i32) {
    %c0_i32 = arith.constant 0 : i32
    %c0_i32_0 = arith.constant 0 : i32
    %c0_i32_1 = arith.constant 0 : i32
    return %c0_i32, %c0_i32_0 : i32, i32
  }
  func.func @transform_5(%arg0: i32) -> (i32, i32) {
    %c0_i32 = arith.constant 0 : i32
    %c0_i32_0 = arith.constant 0 : i32
    %c0_i32_1 = arith.constant 0 : i32
    return %c0_i32, %c0_i32_0 : i32, i32
  }
  func.func @transform_6(%arg0: i32) -> (i32, i32) {
    %c0_i32 = arith.constant 0 : i32
    %c0_i32_0 = arith.constant 0 : i32
    %c0_i32_1 = arith.constant 0 : i32
    return %c0_i32, %c0_i32_0 : i32, i32
  }
  func.func @transform_7(%arg0: i32) -> (i32, i32) {
    %c0_i32 = arith.constant 0 : i32
    %c0_i32_0 = arith.constant 0 : i32
    %c0_i32_1 = arith.constant 0 : i32
    return %c0_i32, %c0_i32_0 : i32, i32
  }
  func.func @transform_8(%arg0: i32) -> (i32, i32, i32) {
    %c0_i32 = arith.constant 0 : i32
    %c0_i32_0 = arith.constant 0 : i32
    %c0_i32_1 = arith.constant 0 : i32
    return %arg0, %c0_i32, %c0_i32_0 : i32, i32, i32
  }
}

</mosaic_0001>

<bundles_post_ra>
// kernel: netd3_forward.2
= control target key start
LH: loop header
LB: loop body
LE: loop exit
PB: predicated region body
PF: predicated region fallthrough
CT: control target
= control target key end

     0   :  { %s1295_s15 = smov 0   ;;  %s1507_s0 = inlined_call_operand.vmem [shape: bf16[2,98,512], index: 0, kind: input, shape index: {}]   ;;  %s1508_s1 = inlined_call_operand.vmem [shape: bf16[512,8], index: 1, kind: input, shape index: {}]   ;;  %s1509_s2 = inlined_call_operand.vmem [shape: f32[1,8], index: 2, kind: input, shape index: {}]   ;;  %s1510_s3 = inlined_call_operand.vmem [shape: f32[1,8], index: 3, kind: input, shape index: {}]   ;;  %s1511_s4 = inlined_call_operand.vmem [shape: bf16[2,98,8], index: 4, kind: output, shape index: {}]  }
   0x1 LB: > { %s967_s16 = sadd.s32 4294967295, %s1268_s15   ;;  %p971_p0 = scmp.ge.s32.totalorder %s1268_s15, 1  ;;  %s1268_s15 = sphi %s1295_s15, %s14_s15  }
   0x2   : > { %p162_p1 = scmp.lt.s32.totalorder %s1268_s15, 3 }
   0x4   : > { %p163_p2 = pnand %p971_p0, %p162_p1 }
   0x5   : > { %v1190_v0 = vld [vmem:[%s1508_s1 + $0x40] sm:$0xff] (!%p163_p2)   ;;  %v1194_v4 = vld [vmem:[%s1508_s1 + $0x48] sm:$0xff] (!%p163_p2)   ;;  %v1198_v8 = vld [vmem:[%s1508_s1 + $0x50] sm:$0xff] (!%p163_p2)   ;;  %p188_p3 = scmp.lt.s32.totalorder (!%p163_p2), %s967_s16, 1  ;;  %vm897_vm0 = vcmask (!%p163_p2), 60416   ;;  %vm910_vm1 = vcmask (!%p163_p2), 57344  }
   0x6   : > { %166 = sbr.rel (%p163_p2) target bundleno = 314 (0x13a), region = 36  ;;  %v1191_v1 = vld [vmem:[%s1508_s1 + $0xc0] sm:$0xff] (!%p163_p2)   ;;  %1064 = vmatprep.subr.bf16.mxu0 (!%p163_p2), %v1190_v0  ;;  %v1195_v5 = vld [vmem:[%s1508_s1 + $0xc8] sm:$0xff] (!%p163_p2)   ;;  %v1199_v9 = vld [vmem:[%s1508_s1 + $0xd0] sm:$0xff] (!%p163_p2)  }
   0x7   : > { %v1192_v2 = vld [vmem:[%s1508_s1] sm:$0xff] (!%p163_p2)   ;;  %1122 = vmatprep.subr.bf16.mxu1 (!%p163_p2), %v1191_v1  ;;  %v1196_v6 = vld [vmem:[%s1508_s1 + $0x8] sm:$0xff] (!%p163_p2)   ;;  %v1200_v10 = vld [vmem:[%s1508_s1 + $0x10] sm:$0xff] (!%p163_p2)  }
   0x8   : > { %v1193_v3 = vld [vmem:[%s1508_s1 + $0x80] sm:$0xff] (!%p163_p2)   ;;  %1065 = vmatpush3.bf16.msra.mxu0 (!%p163_p2), %v1192_v2  ;;  %v1197_v7 = vld [vmem:[%s1508_s1 + $0x88] sm:$0xff] (!%p163_p2)   ;;  %v1201_v11 = vld [vmem:[%s1508_s1 + $0x90] sm:$0xff] (!%p163_p2)  }
   0x9   : > { %1123 = vmatpush3.bf16.msra.mxu1 (!%p163_p2), %v1193_v3  ;;  %1066 = vmatprep.subr.bf16.mxu0 (!%p163_p2), %v1194_v4  ;;  %v1202_v12 = vld [vmem:[%s1508_s1 + $0x58] sm:$0xff] (!%p163_p2)   ;;  %v1206_v16 = vld [vmem:[%s1508_s1 + $0x60] sm:$0xff] (!%p163_p2)   ;;  %v1210_v20 = vld [vmem:[%s1508_s1 + $0x68] sm:$0xff] (!%p163_p2)  }
   0xa   : > { %1124 = vmatprep.subr.bf16.mxu1 (!%p163_p2), %v1195_v5  ;;  %v1203_v13 = vld [vmem:[%s1508_s1 + $0xd8] sm:$0xff] (!%p163_p2)   ;;  %v1207_v17 = vld [vmem:[%s1508_s1 + $0xe0] sm:$0xff] (!%p163_p2)   ;;  %v1211_v21 = vld [vmem:[%s1508_s1 + $0xe8] sm:$0xff] (!%p163_p2)  }
   0xb   : > { %v1204_v14 = vld [vmem:[%s1508_s1 + $0x18] sm:$0xff] (!%p163_p2)   ;;  %v1208_v18 = vld [vmem:[%s1508_s1 + $0x20] sm:$0xff] (!%p163_p2)   ;;  %v1212_v22 = vld [vmem:[%s1508_s1 + $0x28] sm:$0xff] (!%p163_p2)  }
   0xc   : > { %1067 = vmatpush3.bf16.msra.mxu0 (!%p163_p2), %v1196_v6  ;;  %v1205_v15 = vld [vmem:[%s1508_s1 + $0x98] sm:$0xff] (!%p163_p2)   ;;  %v1209_v19 = vld [vmem:[%s1508_s1 + $0xa0] sm:$0xff] (!%p163_p2)   ;;  %v1213_v23 = vld [vmem:[%s1508_s1 + $0xa8] sm:$0xff] (!%p163_p2)  }
   0xd   : > { %1125 = vmatpush3.bf16.msra.mxu1 %v1197_v7  ;;  %1068 = vmatprep.subr.bf16.mxu0 %v1198_v8  ;;  %s1513_s16 = smov (!%p188_p3, %s967_s16), 1  ;;  %v1214_v24 = vld [vmem:[%s1508_s1 + $0x70] sm:$0xff]   ;;  %v1218_v28 = vld [vmem:[%s1508_s1 + $0x78] sm:$0xff]   ;;  %v1440_v7 = vld [vmem:[%s1509_s2] ss:$0 sm:$0xff] }
   0xe   : > { %1126 = vmatprep.subr.bf16.mxu1 %v1199_v9  ;;  %v1215_v25 = vld [vmem:[%s1508_s1 + $0xf0] sm:$0xff]   ;;  %s1180_s21 = smul.u32 208, %s1513_s16  ;;  %v1219_v29 = vld [vmem:[%s1508_s1 + $0xf8] sm:$0xff]  }
   0xf   : > { %v1216_v26 = vld [vmem:[%s1508_s1 + $0x30] sm:$0xff]   ;;  %v1220_v30 = vld [vmem:[%s1508_s1 + $0x38] sm:$0xff]   ;;  %s1181_s17 = smul.u32 52, %s1513_s16 }
  0x10   : > { %1069 = vmatpush3.bf16.msra.mxu0 %v1200_v10  ;;  %v1217_v27 = vld [vmem:[%s1508_s1 + $0xb0] sm:$0xff]   ;;  %s1403_s6 = scalar_lea.vmem %s1507_s0, %s1180_s21  ;;  %v1221_v31 = vld [vmem:[%s1508_s1 + $0xb8] sm:$0xff]  }
  0x11   : > { %1127 = vmatpush3.bf16.msra.mxu1 %v1201_v11  ;;  %1070 = vmatprep.subr.bf16.mxu0 %v1202_v12  ;;  %v1222_v32 = vld [vmem:[%s1403_s6] ss:$16 sps:$4 sm:$0xff]   ;;  %v1224_v33 = vld [vmem:[%s1403_s6 + $0x4] ss:$16 sps:$4 sm:$0xff]   ;;  %v1225_v34 = vld [vmem:[%s1403_s6 + $0x8] ss:$16 sps:$4 sm:$0xff]   ;;  %s1455_s16 = scalar_lea.vmem %s1511_s4, %s1181_s17 }
  0x12   : > { %1128 = vmatprep.subr.bf16.mxu1 %v1203_v13  ;;  %v1227_v35 = vld [vmem:[%s1403_s6 + $0xc] ss:$16 sps:$4 sm:$0xff]   ;;  %647 = vmatprep.mubr.bf16.mxu0 %v1224_v33  ;;  %v1228_v36 = vld [vmem:[%s1403_s6 + $0x24] ss:$16 sps:$4 sm:$0xff]   ;;  %v1232_v38 = vld [vmem:[%s1403_s6 + $0x20] ss:$16 sps:$4 sm:$0xff]  }
  0x13   : > { %735 = vmatprep.mubr.bf16.mxu1 %v1227_v35  ;;  %v1230_v37 = vld [vmem:[%s1403_s6 + $0x2c] ss:$16 sps:$4 sm:$0xff]   ;;  %v1233_v39 = vld [vmem:[%s1403_s6 + $0x28] ss:$16 sps:$4 sm:$0xff]   ;;  %v1234_v40 = vld [vmem:[%s1403_s6 + $0x44] ss:$16 sps:$4 sm:$0xff]  }
  0x14   : > { %1071 = vmatpush3.bf16.msra.mxu0 %v1204_v14  ;;  %v1236_v41 = vld [vmem:[%s1403_s6 + $0x4c] ss:$16 sps:$4 sm:$0xff]   ;;  %v1238_v42 = vld [vmem:[%s1403_s6 + $0x40] ss:$16 sps:$4 sm:$0xff]   ;;  %v1239_v43 = vld [vmem:[%s1403_s6 + $0x48] ss:$16 sps:$4 sm:$0xff]  }
  0x15   : > { %1129 = vmatpush3.bf16.msra.mxu1 %v1205_v15  ;;  %1072 = vmatprep.subr.bf16.mxu0 %v1206_v16  ;;  %v1240_v44 = vld [vmem:[%s1403_s6 + $0x64] ss:$16 sps:$4 sm:$0xff]   ;;  %v1242_v45 = vld [vmem:[%s1403_s6 + $0x6c] ss:$16 sps:$4 sm:$0xff]   ;;  %v1244_v46 = vld [vmem:[%s1403_s6 + $0x60] ss:$16 sps:$4 sm:$0xff]  }
  0x16   : > { %1130 = vmatprep.subr.bf16.mxu1 %v1207_v17  ;;  %v1245_v47 = vld [vmem:[%s1403_s6 + $0x68] ss:$16 sps:$4 sm:$0xff]   ;;  %v1246_v48 = vld [vmem:[%s1403_s6 + $0x84] ss:$16 sps:$4 sm:$0xff]   ;;  %v1248_v49 = vld [vmem:[%s1403_s6 + $0x8c] ss:$16 sps:$4 sm:$0xff]  }
  0x17   : > { %v1250_v50 = vld [vmem:[%s1403_s6 + $0x80] ss:$16 sps:$4 sm:$0xff]   ;;  %v1251_v51 = vld [vmem:[%s1403_s6 + $0x88] ss:$16 sps:$4 sm:$0xff]   ;;  %v1252_v52 = vld [vmem:[%s1403_s6 + $0xa4] ss:$16 sps:$4 sm:$0xff]  }
  0x18   : > { %1073 = vmatpush3.bf16.msra.mxu0 %v1208_v18  ;;  %v1254_v53 = vld [vmem:[%s1403_s6 + $0xac] ss:$16 sps:$4 sm:$0xff]   ;;  %v223_v54 = vld [vmem:[%s1403_s6 + $0xc0] sm:$0x11]  ;;  %v1257_v57 = vld [vmem:[%s1403_s6 + $0xa8] ss:$16 sps:$4 sm:$0xff]  }
  0x19   : > { %1131 = vmatpush3.bf16.msra.mxu1 %v1209_v19  ;;  %1074 = vmatprep.subr.bf16.mxu0 %v1210_v20  ;;  %v224_v55 = vld [vmem:[%s1403_s6 + $0xc8] sm:$0x11]  ;;  %v1256_v56 = vld [vmem:[%s1403_s6 + $0xa0] ss:$16 sps:$4 sm:$0xff]   ;;  %v999_v58 = vcombine.high %v223_v54, %v223_v54  ;;  %v998_v60 = vcombine.low %v223_v54, %v223_v54 }
  0x1a   : > { %1132 = vmatprep.subr.bf16.mxu1 %v1211_v21  ;;  %v1001_v59 = vcombine.high %v224_v55, %v224_v55  ;;  %v1000_v61 = vcombine.low %v224_v55, %v224_v55  ;;  %v1445_v12 = vld [vmem:[%s1510_s3] ss:$0 sm:$0xff] }
  0x1c   : > { %1075 = vmatpush3.bf16.msra.mxu0 %v1212_v22 }
  0x1d   : > { %1133 = vmatpush3.bf16.msra.mxu1 %v1213_v23  ;;  %1076 = vmatprep.subr.bf16.mxu0 %v1214_v24 }
  0x1e   : > { %1134 = vmatprep.subr.bf16.mxu1 %v1215_v25 }
  0x20   : > { %1077 = vmatpush3.bf16.msra.mxu0 %v1216_v26 }
  0x21   : > { %1135 = vmatpush3.bf16.msra.mxu1 %v1217_v27  ;;  %1078 = vmatprep.subr.bf16.mxu0 %v1218_v28 }
  0x22   : > { %1136 = vmatprep.subr.bf16.mxu1 %v1219_v29 }
  0x24   : > { %1079 = vmatpush3.bf16.msra.mxu0 %v1220_v30 }
  0x25   : > { %1137 = vmatpush3.bf16.msra.mxu1 %v1221_v31 }
  0x27   : > { %648 = vmatmul.mubr.bf16.vlgmr.msra.gmra.mrb[0].mxu0 %v1222_v32 }
  0x28   : > { %736 = vmatmul.mubr.bf16.vlgmr.msra.gmra.mrb[0].mxu1 %v1225_v34  ;;  %655 = vmatprep.mubr.bf16.mxu0 %v1228_v36 }
  0x29   : > { %743 = vmatprep.mubr.bf16.mxu1 %v1230_v37 }
  0x2f   : > { %656 = vmatmul.mubr.bf16.gmra.mrb[4].mxu0 %v1232_v38 }
  0x30   : > { %744 = vmatmul.mubr.bf16.gmra.mrb[4].mxu1 %v1233_v39  ;;  %663 = vmatprep.mubr.bf16.mxu0 %v1234_v40 }
  0x31   : > { %751 = vmatprep.mubr.bf16.mxu1 %v1236_v41 }
  0x37   : > { %664 = vmatmul.mubr.bf16.gmra.mrb[8].mxu0 %v1238_v42 }
  0x38   : > { %752 = vmatmul.mubr.bf16.gmra.mrb[8].mxu1 %v1239_v43  ;;  %671 = vmatprep.mubr.bf16.mxu0 %v1240_v44 }
  0x39   : > { %759 = vmatprep.mubr.bf16.mxu1 %v1242_v45 }
  0x3f   : > { %672 = vmatmul.mubr.bf16.gmra.mrb[12].mxu0 %v1244_v46 }
  0x40   : > { %760 = vmatmul.mubr.bf16.gmra.mrb[12].mxu1 %v1245_v47  ;;  %679 = vmatprep.mubr.bf16.mxu0 %v1246_v48 }
  0x41   : > { %767 = vmatprep.mubr.bf16.mxu1 %v1248_v49 }
  0x47   : > { %680 = vmatmul.mubr.bf16.gmra.mrb[16].mxu0 %v1250_v50 }
  0x48   : > { %768 = vmatmul.mubr.bf16.gmra.mrb[16].mxu1 %v1251_v51  ;;  %687 = vmatprep.mubr.bf16.mxu0 %v1252_v52 }
  0x49   : > { %775 = vmatprep.mubr.bf16.mxu1 %v1254_v53 }
  0x4f   : > { %688 = vmatmul.mubr.bf16.gmra.mrb[20].mxu0 %v1256_v56 }
  0x50   : > { %776 = vmatmul.mubr.bf16.gmra.mrb[20].mxu1 %v1257_v57  ;;  %695 = vmatprep.mubr.bf16.mxu0 %v999_v58 }
  0x51   : > { %783 = vmatprep.mubr.bf16.mxu1 %v1001_v59 }
  0x57   : > { %696 = vmatmul.mubr.bf16.gmra.mrb[24].mxu0 %v998_v60 }
  0x58   : > { %784 = vmatmul.mubr.bf16.gmra.mrb[24].mxu1 %v1000_v61 }
  0xfa   : > { %v1080_v62 = vpop.f32.mrb[0].mxu0 }
  0xfb   : > { %v1138_v63 = vpop.f32.mrb[0].mxu1  ;;  %v1081_v0 = vpop.f32.mrb[1].mxu0 }
  0xfc   : > { %v1082_v1 = vadd.f32 %v1081_v0, %v1080_v62  ;;  %v1139_v2 = vpop.f32.mrb[1].mxu1  ;;  %v1083_v3 = vpop.f32.mrb[2].mxu0 }
  0xfd   : > { %v1140_v4 = vadd.f32 %v1139_v2, %v1138_v63  ;;  %v1141_v5 = vpop.f32.mrb[2].mxu1  ;;  %v1084_v6 = vpop.f32.mrb[3].mxu0 }
  0xfe   : > { %v1085_v8 = vadd.f32 %v1084_v6, %v1083_v3  ;;  %v1142_v9 = vpop.f32.mrb[3].mxu1 }
  0xff   : > { %v738_v10 = vadd.f32 %v1140_v4, %v1082_v1  ;;  %v1143_v11 = vadd.f32 %v1142_v9, %v1141_v5 }
 0x101   : > { %v798_v13 = vmul.f32 %v1440_v7, %v738_v10  ;;  %v741_v14 = vadd.f32 %v1143_v11, %v1085_v8 }
 0x102   : > { %v1086_v15 = vpop.f32.mrb[4].mxu0 }
 0x103   : > { %v818_v16 = vadd.f32 %v1445_v12, %v798_v13  ;;  %v799_v17 = vmul.f32 %v1440_v7, %v741_v14  ;;  %v1144_v18 = vpop.f32.mrb[4].mxu1  ;;  %v1087_v19 = vpop.f32.mrb[5].mxu0 }
 0x104   : > { %v1088_v20 = vadd.f32 %v1087_v19, %v1086_v15  ;;  %v1145_v21 = vpop.f32.mrb[5].mxu1  ;;  %v1089_v22 = vpop.f32.mrb[6].mxu0 }
 0x105   : > { %v831_v23 = vmax.f32 %v818_v16, 0.0  ;;  %v819_v24 = vadd.f32 %v1445_v12, %v799_v17  ;;  %v1146_v25 = vadd.f32 %v1145_v21, %v1144_v18  ;;  %v1147_v26 = vpop.f32.mrb[6].mxu1  ;;  %v1090_v27 = vpop.f32.mrb[7].mxu0 }
 0x106   : > { %v1091_v28 = vadd.f32 %v1090_v27, %v1089_v22  ;;  %v1148_v29 = vpop.f32.mrb[7].mxu1 }
 0x107   : > { %v1051_v30 = vpack.c.bf16 %v831_v23, %v831_v23  ;;  %v832_v31 = vmax.f32 %v819_v24, 0.0  ;;  %v746_v32 = vadd.f32 %v1146_v25, %v1088_v20  ;;  %v1149_v33 = vadd.f32 %v1148_v29, %v1147_v26 }
 0x109   : > { %898 = vst.msk [vmem:[%s1455_s16] sm:$0xf] %vm897_vm0, %v1051_v30  ;;  %v1052_v34 = vpack.c.bf16 %v832_v31, %v832_v31  ;;  %v800_v35 = vmul.f32 %v1440_v7, %v746_v32  ;;  %v749_v36 = vadd.f32 %v1149_v33, %v1091_v28 }
 0x10a   : > { %v1092_v37 = vpop.f32.mrb[8].mxu0 }
 0x10b   : > { %899 = vst.msk [vmem:[%s1455_s16 + $0x4] sm:$0xf] %vm897_vm0, %v1052_v34  ;;  %v820_v38 = vadd.f32 %v1445_v12, %v800_v35  ;;  %v801_v39 = vmul.f32 %v1440_v7, %v749_v36  ;;  %v1150_v40 = vpop.f32.mrb[8].mxu1  ;;  %v1093_v41 = vpop.f32.mrb[9].mxu0 }
 0x10c   : > { %v1094_v42 = vadd.f32 %v1093_v41, %v1092_v37  ;;  %v1151_v43 = vpop.f32.mrb[9].mxu1  ;;  %v1095_v44 = vpop.f32.mrb[10].mxu0 }
 0x10d   : > { %v833_v45 = vmax.f32 %v820_v38, 0.0  ;;  %v821_v46 = vadd.f32 %v1445_v12, %v801_v39  ;;  %v1152_v47 = vadd.f32 %v1151_v43, %v1150_v40  ;;  %v1153_v48 = vpop.f32.mrb[10].mxu1  ;;  %v1096_v49 = vpop.f32.mrb[11].mxu0 }
 0x10e   : > { %v1097_v50 = vadd.f32 %v1096_v49, %v1095_v44  ;;  %v1154_v51 = vpop.f32.mrb[11].mxu1 }
 0x10f   : > { %v1053_v52 = vpack.c.bf16 %v833_v45, %v833_v45  ;;  %v834_v53 = vmax.f32 %v821_v46, 0.0  ;;  %v754_v54 = vadd.f32 %v1152_v47, %v1094_v42  ;;  %v1155_v55 = vadd.f32 %v1154_v51, %v1153_v48 }
 0x111   : > { %900 = vst.msk [vmem:[%s1455_s16 + $0x8] sm:$0xf] %vm897_vm0, %v1053_v52  ;;  %v1054_v56 = vpack.c.bf16 %v834_v53, %v834_v53  ;;  %v802_v57 = vmul.f32 %v1440_v7, %v754_v54  ;;  %v757_v58 = vadd.f32 %v1155_v55, %v1097_v50 }
 0x112   : > { %v1098_v59 = vpop.f32.mrb[12].mxu0 }
 0x113   : > { %901 = vst.msk [vmem:[%s1455_s16 + $0xc] sm:$0xf] %vm897_vm0, %v1054_v56  ;;  %v822_v60 = vadd.f32 %v1445_v12, %v802_v57  ;;  %v803_v61 = vmul.f32 %v1440_v7, %v757_v58  ;;  %v1156_v62 = vpop.f32.mrb[12].mxu1  ;;  %v1099_v63 = vpop.f32.mrb[13].mxu0 }
 0x114   : > { %v1100_v0 = vadd.f32 %v1099_v63, %v1098_v59  ;;  %v1157_v1 = vpop.f32.mrb[13].mxu1  ;;  %v1101_v2 = vpop.f32.mrb[14].mxu0 }
 0x115   : > { %v835_v3 = vmax.f32 %v822_v60, 0.0  ;;  %v823_v4 = vadd.f32 %v1445_v12, %v803_v61  ;;  %v1158_v5 = vadd.f32 %v1157_v1, %v1156_v62  ;;  %v1159_v6 = vpop.f32.mrb[14].mxu1  ;;  %v1102_v8 = vpop.f32.mrb[15].mxu0 }
 0x116   : > { %v1103_v9 = vadd.f32 %v1102_v8, %v1101_v2  ;;  %v1160_v10 = vpop.f32.mrb[15].mxu1 }
 0x117   : > { %v1055_v11 = vpack.c.bf16 %v835_v3, %v835_v3  ;;  %v836_v13 = vmax.f32 %v823_v4, 0.0  ;;  %v762_v14 = vadd.f32 %v1158_v5, %v1100_v0  ;;  %v1161_v15 = vadd.f32 %v1160_v10, %v1159_v6 }
 0x119   : > { %902 = vst.msk [vmem:[%s1455_s16 + $0x10] sm:$0xf] %vm897_vm0, %v1055_v11  ;;  %v1056_v16 = vpack.c.bf16 %v836_v13, %v836_v13  ;;  %v804_v17 = vmul.f32 %v1440_v7, %v762_v14  ;;  %v765_v18 = vadd.f32 %v1161_v15, %v1103_v9 }
 0x11a   : > { %v1104_v19 = vpop.f32.mrb[16].mxu0 }
 0x11b   : > { %903 = vst.msk [vmem:[%s1455_s16 + $0x14] sm:$0xf] %vm897_vm0, %v1056_v16  ;;  %v824_v20 = vadd.f32 %v1445_v12, %v804_v17  ;;  %v805_v21 = vmul.f32 %v1440_v7, %v765_v18  ;;  %v1162_v22 = vpop.f32.mrb[16].mxu1  ;;  %v1105_v23 = vpop.f32.mrb[17].mxu0 }
 0x11c   : > { %v1106_v24 = vadd.f32 %v1105_v23, %v1104_v19  ;;  %v1163_v25 = vpop.f32.mrb[17].mxu1  ;;  %v1107_v26 = vpop.f32.mrb[18].mxu0 }
 0x11d   : > { %v837_v27 = vmax.f32 %v824_v20, 0.0  ;;  %v825_v28 = vadd.f32 %v1445_v12, %v805_v21  ;;  %v1164_v29 = vadd.f32 %v1163_v25, %v1162_v22  ;;  %v1165_v30 = vpop.f32.mrb[18].mxu1  ;;  %v1108_v31 = vpop.f32.mrb[19].mxu0 }
 0x11e   : > { %v1109_v32 = vadd.f32 %v1108_v31, %v1107_v26  ;;  %v1166_v33 = vpop.f32.mrb[19].mxu1 }
 0x11f   : > { %v1057_v34 = vpack.c.bf16 %v837_v27, %v837_v27  ;;  %v838_v35 = vmax.f32 %v825_v28, 0.0  ;;  %v770_v36 = vadd.f32 %v1164_v29, %v1106_v24  ;;  %v1167_v37 = vadd.f32 %v1166_v33, %v1165_v30 }
 0x121   : > { %904 = vst.msk [vmem:[%s1455_s16 + $0x18] sm:$0xf] %vm897_vm0, %v1057_v34  ;;  %v1058_v38 = vpack.c.bf16 %v838_v35, %v838_v35  ;;  %v806_v39 = vmul.f32 %v1440_v7, %v770_v36  ;;  %v773_v40 = vadd.f32 %v1167_v37, %v1109_v32 }
 0x122   : > { %v1110_v41 = vpop.f32.mrb[20].mxu0 }
 0x123   : > { %905 = vst.msk [vmem:[%s1455_s16 + $0x1c] sm:$0xf] %vm897_vm0, %v1058_v38  ;;  %v826_v42 = vadd.f32 %v1445_v12, %v806_v39  ;;  %v807_v43 = vmul.f32 %v1440_v7, %v773_v40  ;;  %v1168_v44 = vpop.f32.mrb[20].mxu1  ;;  %v1111_v45 = vpop.f32.mrb[21].mxu0 }
 0x124   : > { %v1112_v46 = vadd.f32 %v1111_v45, %v1110_v41  ;;  %v1169_v47 = vpop.f32.mrb[21].mxu1  ;;  %v1113_v48 = vpop.f32.mrb[22].mxu0 }
 0x125   : > { %v839_v49 = vmax.f32 %v826_v42, 0.0  ;;  %v827_v50 = vadd.f32 %v1445_v12, %v807_v43  ;;  %v1170_v51 = vadd.f32 %v1169_v47, %v1168_v44  ;;  %v1171_v52 = vpop.f32.mrb[22].mxu1  ;;  %v1114_v53 = vpop.f32.mrb[23].mxu0 }
 0x126   : > { %v1115_v54 = vadd.f32 %v1114_v53, %v1113_v48  ;;  %v1172_v55 = vpop.f32.mrb[23].mxu1 }
 0x127   : > { %v1059_v56 = vpack.c.bf16 %v839_v49, %v839_v49  ;;  %v840_v57 = vmax.f32 %v827_v50, 0.0  ;;  %v778_v58 = vadd.f32 %v1170_v51, %v1112_v46  ;;  %v1173_v59 = vadd.f32 %v1172_v55, %v1171_v52 }
 0x129   : > { %906 = vst.msk [vmem:[%s1455_s16 + $0x20] sm:$0xf] %vm897_vm0, %v1059_v56  ;;  %v1060_v60 = vpack.c.bf16 %v840_v57, %v840_v57  ;;  %v808_v61 = vmul.f32 %v1440_v7, %v778_v58  ;;  %v781_v62 = vadd.f32 %v1173_v59, %v1115_v54 }
 0x12a   : > { %v1116_v63 = vpop.f32.mrb[24].mxu0 }
 0x12b   : > { %907 = vst.msk [vmem:[%s1455_s16 + $0x24] sm:$0xf] %vm897_vm0, %v1060_v60  ;;  %v828_v0 = vadd.f32 %v1445_v12, %v808_v61  ;;  %v809_v1 = vmul.f32 %v1440_v7, %v781_v62  ;;  %v1174_v2 = vpop.f32.mrb[24].mxu1  ;;  %v1117_v3 = vpop.f32.mrb[25].mxu0 }
 0x12c   : > { %v1118_v4 = vadd.f32 %v1117_v3, %v1116_v63  ;;  %v1175_v5 = vpop.f32.mrb[25].mxu1  ;;  %v1119_v6 = vpop.f32.mrb[26].mxu0 }
 0x12d   : > { %v841_v8 = vmax.f32 %v828_v0, 0.0  ;;  %v829_v9 = vadd.f32 %v1445_v12, %v809_v1  ;;  %v1176_v10 = vadd.f32 %v1175_v5, %v1174_v2  ;;  %v1177_v11 = vpop.f32.mrb[26].mxu1  ;;  %v1120_v13 = vpop.f32.mrb[27].mxu0 }
 0x12e   : > { %v1178_v14 = vpop.f32.mrb[27].mxu1 }
 0x12f   : > { %v1061_v15 = vpack.c.bf16 %v841_v8, %v841_v8  ;;  %v842_v16 = vmax.f32 %v829_v9, 0.0  ;;  %v786_v17 = vadd.f32 %v1176_v10, %v1118_v4 }
 0x131   : > { %908 = vst.msk [vmem:[%s1455_s16 + $0x28] sm:$0xf] %vm897_vm0, %v1061_v15  ;;  %v1062_v18 = vpack.c.bf16 %v842_v16, %v842_v16  ;;  %v810_v19 = vmul.f32 %v1440_v7, %v786_v17 }
 0x133   : > { %909 = vst.msk [vmem:[%s1455_s16 + $0x2c] sm:$0xf] %vm897_vm0, %v1062_v18  ;;  %v830_v20 = vadd.f32 %v1445_v12, %v810_v19 }
 0x135   : > { %v843_v21 = vmax.f32 %v830_v20, 0.0 }
 0x137   : > { %v1063_v22 = vpack.c.bf16 %v843_v21, %v843_v21 }
 0x139   : > { %911 = vst.msk [vmem:[%s1455_s16 + $0x30] sm:$0x1] %vm910_vm1, %v1063_v22 }
 0x13a PF: > { %s14_s15 = sadd.s32 1, %s1268_s15  }
 0x13b   : > { %p11_p4 = scmp.ge.s32.totalorder %s14_s15, 4  }
 0x13d   :  { %13 = sbr.rel (!%p11_p4) target bundleno = 1 (0x1), region = 66 }

// kernel: netd3_forward.3
= control target key start
LH: loop header
LB: loop body
LE: loop exit
PB: predicated region body
PF: predicated region fallthrough
CT: control target
= control target key end

     0   :  { %s4018_s29 = smov 0   ;;  %s5081_s0 = inlined_call_operand.vmem [shape: bf16[2,1,784], index: 0, kind: input, shape index: {}]   ;;  %s5082_s1 = inlined_call_operand.vmem [shape: bf16[2,16,512], index: 1, kind: input, shape index: {}]   ;;  %s5083_s2 = inlined_call_operand.vmem [shape: bf16[784,512], index: 2, kind: input, shape index: {}]   ;;  %s5084_s3 = inlined_call_operand.vmem [shape: bf16[512,512], index: 3, kind: input, shape index: {}]   ;;  %s5085_s4 = inlined_call_operand.vmem [shape: f32[1,512], index: 4, kind: input, shape index: {}]   ;;  %s5086_s5 = inlined_call_operand.vmem [shape: f32[1,512], index: 5, kind: input, shape index: {}]   ;;  %s5087_s6 = inlined_call_operand.vmem [shape: f32[1,512], index: 6, kind: input, shape index: {}]   ;;  %s5088_s7 = inlined_call_operand.<no memory space> [shape: f32[1,1], index: 7, kind: input, shape index: {}]   ;;  %s5089_s8 = inlined_call_operand.vmem [shape: f32[2,1,1], index: 8, kind: output, shape index: {}]  }
   0x1   :  { %v13_v0 = vstv %s5088_s7 }
   0x2   :  { %14 = vst [vmem:[#allocation2] sm:$0x1] %v13_v0 }
   0x3 LB: > { %s3071_s30 = sadd.s32 4294967295, %s3966_s29   ;;  %p3075_p0 = scmp.ge.s32.totalorder %s3966_s29, 1  ;;  %s3966_s29 = sphi %s4018_s29, %s20_s29  }
   0x4   : > { %p273_p1 = scmp.lt.s32.totalorder %s3966_s29, 3 }
   0x6   : > { %p274_p2 = pnand %p3075_p0, %p273_p1 }
   0x7   : > { %v3463_v1 = vld [vmem:[%s5083_s2 + $0x4] ss:$16 sps:$4 sm:$0xff] (!%p274_p2)   ;;  %v3465_v2 = vld [vmem:[%s5083_s2 + $0xc] ss:$16 sps:$4 sm:$0xff] (!%p274_p2)   ;;  %v3467_v3 = vld [vmem:[%s5083_s2] ss:$16 sps:$4 sm:$0xff] (!%p274_p2)   ;;  %v524_v39 = vlaneseq (!%p274_p2) }
   0x8   : > { %277 = sbr.rel (%p274_p2) target bundleno = 759 (0x2f7), region = 52  ;;  %1558 = vmatprep.subr.bf16.mxu0 (!%p274_p2), %v3463_v1  ;;  %v3468_v4 = vld [vmem:[%s5083_s2 + $0x8] ss:$16 sps:$4 sm:$0xff] (!%p274_p2)   ;;  %1722 = vmatprep.subr.bf16.mxu1 (!%p274_p2), %v3465_v2  ;;  %v3469_v5 = vld [vmem:[%s5083_s2 + $0x24] ss:$16 sps:$4 sm:$0xff] (!%p274_p2)   ;;  %p309_p3 = scmp.lt.s32.totalorder (!%p274_p2), %s3071_s30, 1 }
   0x9   : > { %1559 = vmatpush1.bf16.msra.mxu0 (!%p274_p2), %v3467_v3  ;;  %1723 = vmatpush1.bf16.msra.mxu1 (!%p274_p2), %v3468_v4  ;;  %v3471_v6 = vld [vmem:[%s5083_s2 + $0x2c] ss:$16 sps:$4 sm:$0xff] (!%p274_p2)   ;;  %v3473_v7 = vld [vmem:[%s5083_s2 + $0x20] ss:$16 sps:$4 sm:$0xff] (!%p274_p2)   ;;  %v3474_v8 = vld [vmem:[%s5083_s2 + $0x28] ss:$16 sps:$4 sm:$0xff] (!%p274_p2)  }
   0xa   : > { %1560 = vmatprep.subr.bf16.mxu0 (!%p274_p2), %v3469_v5  ;;  %1724 = vmatprep.subr.bf16.mxu1 (!%p274_p2), %v3471_v6  ;;  %v3475_v9 = vld [vmem:[%s5083_s2 + $0x44] ss:$16 sps:$4 sm:$0xff] (!%p274_p2)   ;;  %v3477_v10 = vld [vmem:[%s5083_s2 + $0x4c] ss:$16 sps:$4 sm:$0xff] (!%p274_p2)   ;;  %v3479_v11 = vld [vmem:[%s5083_s2 + $0x40] ss:$16 sps:$4 sm:$0xff] (!%p274_p2)  }
   0xb   : > { %v3480_v12 = vld [vmem:[%s5083_s2 + $0x48] ss:$16 sps:$4 sm:$0xff] (!%p274_p2)   ;;  %v3481_v13 = vld [vmem:[%s5083_s2 + $0x64] ss:$16 sps:$4 sm:$0xff] (!%p274_p2)   ;;  %v3483_v14 = vld [vmem:[%s5083_s2 + $0x6c] ss:$16 sps:$4 sm:$0xff] (!%p274_p2)  }
   0xc   : > { %v3485_v15 = vld [vmem:[%s5083_s2 + $0x60] ss:$16 sps:$4 sm:$0xff] (!%p274_p2)   ;;  %v3486_v16 = vld [vmem:[%s5083_s2 + $0x68] ss:$16 sps:$4 sm:$0xff] (!%p274_p2)   ;;  %v3487_v17 = vld [vmem:[%s5083_s2 + $0x84] ss:$16 sps:$4 sm:$0xff] (!%p274_p2)  }
   0xd   : > { %1561 = vmatpush1.bf16.msra.mxu0 (!%p274_p2), %v3473_v7  ;;  %1725 = vmatpush1.bf16.msra.mxu1 (!%p274_p2), %v3474_v8  ;;  %v3489_v18 = vld [vmem:[%s5083_s2 + $0x8c] ss:$16 sps:$4 sm:$0xff] (!%p274_p2)   ;;  %v3491_v19 = vld [vmem:[%s5083_s2 + $0x80] ss:$16 sps:$4 sm:$0xff] (!%p274_p2)   ;;  %v3492_v20 = vld [vmem:[%s5083_s2 + $0x88] ss:$16 sps:$4 sm:$0xff] (!%p274_p2)  }
   0xe   : > { %1562 = vmatprep.subr.bf16.mxu0 (!%p274_p2), %v3475_v9  ;;  %1726 = vmatprep.subr.bf16.mxu1 (!%p274_p2), %v3477_v10  ;;  %v3493_v21 = vld [vmem:[%s5083_s2 + $0xa4] ss:$16 sps:$4 sm:$0xff] (!%p274_p2)   ;;  %v3495_v22 = vld [vmem:[%s5083_s2 + $0xac] ss:$16 sps:$4 sm:$0xff] (!%p274_p2)   ;;  %v3497_v23 = vld [vmem:[%s5083_s2 + $0xa0] ss:$16 sps:$4 sm:$0xff] (!%p274_p2)  }
   0xf   : > { %v3498_v24 = vld [vmem:[%s5083_s2 + $0xa8] ss:$16 sps:$4 sm:$0xff]   ;;  %v3499_v25 = vld [vmem:[%s5083_s2 + $0xc4] ss:$16 sps:$4 sm:$0xff]   ;;  %v3501_v26 = vld [vmem:[%s5083_s2 + $0xcc] ss:$16 sps:$4 sm:$0xff]  }
  0x10   : > { %v3503_v27 = vld [vmem:[%s5083_s2 + $0xc0] ss:$16 sps:$4 sm:$0xff]   ;;  %v3504_v28 = vld [vmem:[%s5083_s2 + $0xc8] ss:$16 sps:$4 sm:$0xff]   ;;  %v3505_v29 = vld [vmem:[%s5083_s2 + $0xe4] ss:$16 sps:$4 sm:$0xff]  }
  0x11   : > { %1563 = vmatpush1.bf16.msra.mxu0 %v3479_v11  ;;  %1727 = vmatpush1.bf16.msra.mxu1 %v3480_v12  ;;  %v3507_v30 = vld [vmem:[%s5083_s2 + $0xec] ss:$16 sps:$4 sm:$0xff]   ;;  %v3509_v31 = vld [vmem:[%s5083_s2 + $0xe0] ss:$16 sps:$4 sm:$0xff]   ;;  %v3510_v32 = vld [vmem:[%s5083_s2 + $0xe8] ss:$16 sps:$4 sm:$0xff]  }
  0x12   : > { %1564 = vmatprep.subr.bf16.mxu0 %v3481_v13  ;;  %1728 = vmatprep.subr.bf16.mxu1 %v3483_v14  ;;  %v3511_v33 = vld [vmem:[%s5083_s2 + $0x104] ss:$16 sps:$4 sm:$0xff]   ;;  %v3513_v34 = vld [vmem:[%s5083_s2 + $0x10c] ss:$16 sps:$4 sm:$0xff]   ;;  %v3515_v35 = vld [vmem:[%s5083_s2 + $0x100] ss:$16 sps:$4 sm:$0xff]  }
  0x13   : > { %v3516_v36 = vld [vmem:[%s5083_s2 + $0x108] ss:$16 sps:$4 sm:$0xff]   ;;  %s5091_s30 = smov (!%p309_p3, %s3071_s30), 1  ;;  %v3968_v37 = vmov 1966171168   ;;  %v4150_v44 = vshrl.u32 %v524_v39, 7 }
  0x14   : > { %v522_v38 = vunpack.c.l.s4 %v3968_v37  ;;  %v3517_v40 = vld [vmem:[%s5083_s2 + $0x124] ss:$16 sps:$4 sm:$0xff]   ;;  %v3519_v41 = vld [vmem:[%s5083_s2 + $0x12c] ss:$16 sps:$4 sm:$0xff]   ;;  %v3521_v42 = vld [vmem:[%s5083_s2 + $0x120] ss:$16 sps:$4 sm:$0xff]   ;;  %s320_s14 = scalar_lea.vmem %s5089_s8, %s5091_s30 }
  0x15   : > { %1565 = vmatpush1.bf16.msra.mxu0 %v3485_v15  ;;  %1729 = vmatpush1.bf16.msra.mxu1 %v3486_v16  ;;  %s3452_s23 = smul.u32 7, %s5091_s30  ;;  %v3522_v45 = vld [vmem:[%s5083_s2 + $0x128] ss:$16 sps:$4 sm:$0xff]   ;;  %v3523_v46 = vld [vmem:[%s5083_s2 + $0x144] ss:$16 sps:$4 sm:$0xff]   ;;  %s3411_s24 = sshll.u32 %s5091_s30, 5 }
  0x16   : > { %1566 = vmatprep.subr.bf16.mxu0 %v3487_v17  ;;  %1730 = vmatprep.subr.bf16.mxu1 %v3489_v18  ;;  %v523_v43 = vunpack.c.0.s8 %v522_v38  ;;  %v3525_v47 = vld [vmem:[%s5083_s2 + $0x14c] ss:$16 sps:$4 sm:$0xff]   ;;  %v3527_v48 = vld [vmem:[%s5083_s2 + $0x140] ss:$16 sps:$4 sm:$0xff]   ;;  %v3528_v49 = vld [vmem:[%s5083_s2 + $0x148] ss:$16 sps:$4 sm:$0xff]   ;;  %s4583_s7 = scalar_lea.vmem %s5082_s1, %s3411_s24 }
  0x17   : > { %s312_s15 = scalar_lea.vmem %s5081_s0, %s3452_s23  ;;  %v3529_v51 = vld [vmem:[%s5083_s2 + $0x164] ss:$16 sps:$4 sm:$0xff]   ;;  %v3531_v52 = vld [vmem:[%s5083_s2 + $0x16c] ss:$16 sps:$4 sm:$0xff]   ;;  %v3533_v54 = vld [vmem:[%s5083_s2 + $0x160] ss:$16 sps:$4 sm:$0xff]  }
  0x18   : > { %v526_v50 = vsub.s32 %v523_v43, %v4150_v44  ;;  %v322_v53 = vld [vmem:[%s312_s15] sm:$0x7f]  ;;  %v3534_v56 = vld [vmem:[%s5083_s2 + $0x168] ss:$16 sps:$4 sm:$0xff]   ;;  %v3537_v58 = vld [vmem:[%s5083_s2 + $0x18c] ss:$16 sps:$4 sm:$0xff]  }
  0x19   : > { %1567 = vmatpush1.bf16.msra.mxu0 %v3491_v19  ;;  %1731 = vmatpush1.bf16.msra.mxu1 %v3492_v20  ;;  %v3535_v57 = vld [vmem:[%s5083_s2 + $0x184] ss:$16 sps:$4 sm:$0xff]   ;;  %v3539_v60 = vld [vmem:[%s5083_s2 + $0x180] ss:$16 sps:$4 sm:$0xff]   ;;  %v3540_v62 = vld [vmem:[%s5083_s2 + $0x188] ss:$16 sps:$4 sm:$0xff]   ;;  %v520_v9 = vcombine.high %v322_v53, %v322_v53 }
  0x1a   : > { %1568 = vmatprep.subr.bf16.mxu0 %v3493_v21  ;;  %1732 = vmatprep.subr.bf16.mxu1 %v3495_v22  ;;  %v527_v55 = vrot.slane %v322_v53, %v526_v50  ;;  %v3541_v63 = vld [vmem:[%s5083_s2 + $0x1a4] ss:$16 sps:$4 sm:$0xff]   ;;  %v3543_v0 = vld [vmem:[%s5083_s2 + $0x1ac] ss:$16 sps:$4 sm:$0xff]   ;;  %v3545_v1 = vld [vmem:[%s5083_s2 + $0x1a0] ss:$16 sps:$4 sm:$0xff]  }
  0x1b   : > { %v3546_v2 = vld [vmem:[%s5083_s2 + $0x1a8] ss:$16 sps:$4 sm:$0xff]   ;;  %v3547_v3 = vld [vmem:[%s5083_s2 + $0x1c4] ss:$16 sps:$4 sm:$0xff]   ;;  %v3549_v4 = vld [vmem:[%s5083_s2 + $0x1cc] ss:$16 sps:$4 sm:$0xff]   ;;  %v534_v12 = vrot.slane %v520_v9, %v526_v50 }
  0x1c   : > { %v535_v59 = vcombine.high %v527_v55, %v527_v55  ;;  %v3551_v5 = vld [vmem:[%s5083_s2 + $0x1c0] ss:$16 sps:$4 sm:$0xff]   ;;  %v3552_v6 = vld [vmem:[%s5083_s2 + $0x1c8] ss:$16 sps:$4 sm:$0xff]   ;;  %v3553_v7 = vld [vmem:[%s5083_s2 + $0x1e4] ss:$16 sps:$4 sm:$0xff]   ;;  %v4240_v17 = vrot.slane %v527_v55, %v526_v50 }
  0x1d   : > { %1569 = vmatpush1.bf16.msra.mxu0 %v3497_v23  ;;  %1733 = vmatpush1.bf16.msra.mxu1 %v3498_v24  ;;  %v3555_v8 = vld [vmem:[%s5083_s2 + $0x1ec] ss:$16 sps:$4 sm:$0xff]   ;;  %v3557_v10 = vld [vmem:[%s5083_s2 + $0x1e0] ss:$16 sps:$4 sm:$0xff]   ;;  %v3558_v11 = vld [vmem:[%s5083_s2 + $0x1e8] ss:$16 sps:$4 sm:$0xff]   ;;  %v536_v15 = vcombine.high %v534_v12, %v534_v12  ;;  %v4247_v20 = vrot.slane %v534_v12, %v526_v50 }
  0x1e   : > { %1570 = vmatprep.subr.bf16.mxu0 %v3499_v25  ;;  %1734 = vmatprep.subr.bf16.mxu1 %v3501_v26  ;;  %v557_v61 = vrot.slane %v535_v59, %v526_v50  ;;  %v3561_v13 = vld [vmem:[%s5083_s2 + $0x204] ss:$16 sps:$4 sm:$0xff]   ;;  %v3564_v14 = vld [vmem:[%s5083_s2 + $0x20c] ss:$16 sps:$4 sm:$0xff]   ;;  %v3559_v16 = vld [vmem:[%s5083_s2 + $0x200] ss:$16 sps:$4 sm:$0xff]  }
  0x1f   : > { %v3562_v18 = vld [vmem:[%s5083_s2 + $0x208] ss:$16 sps:$4 sm:$0xff]   ;;  %v4245_v19 = vrot.slane %v536_v15, %v526_v50  ;;  %v3567_v21 = vld [vmem:[%s5083_s2 + $0x224] ss:$16 sps:$4 sm:$0xff]   ;;  %v3570_v22 = vld [vmem:[%s5083_s2 + $0x22c] ss:$16 sps:$4 sm:$0xff]  }
  0x20   : > { %1590 = vmatprep.mubr.bf16.mxu0 %v557_v61  ;;  %1754 = vmatprep.mubr.bf16.mxu1 %v557_v61  ;;  %v567_v23 = vcombine.high %v557_v61, %v557_v61  ;;  %v3565_v24 = vld [vmem:[%s5083_s2 + $0x220] ss:$16 sps:$4 sm:$0xff]   ;;  %v3568_v25 = vld [vmem:[%s5083_s2 + $0x228] ss:$16 sps:$4 sm:$0xff]   ;;  %v3573_v26 = vld [vmem:[%s5083_s2 + $0x244] ss:$16 sps:$4 sm:$0xff]  }
  0x21   : > { %1571 = vmatpush1.bf16.msra.mxu0 %v3503_v27  ;;  %1735 = vmatpush1.bf16.msra.mxu1 %v3504_v28  ;;  %v3576_v27 = vld [vmem:[%s5083_s2 + $0x24c] ss:$16 sps:$4 sm:$0xff]   ;;  %v3571_v28 = vld [vmem:[%s5083_s2 + $0x240] ss:$16 sps:$4 sm:$0xff]   ;;  %v3586_v37 = vld [vmem:[%s5083_s2 + $0x288] ss:$16 sps:$4 sm:$0xff]  }
  0x22   : > { %1572 = vmatprep.subr.bf16.mxu0 %v3505_v29  ;;  %1736 = vmatprep.subr.bf16.mxu1 %v3507_v30  ;;  %v3574_v29 = vld [vmem:[%s5083_s2 + $0x248] ss:$16 sps:$4 sm:$0xff]   ;;  %v3579_v30 = vld [vmem:[%s5083_s2 + $0x264] ss:$16 sps:$4 sm:$0xff]   ;;  %v3594_v39 = vld [vmem:[%s5083_s2 + $0x2ac] ss:$16 sps:$4 sm:$0xff]  }
  0x23   : > { %v3591_v38 = vld [vmem:[%s5083_s2 + $0x2a4] ss:$16 sps:$4 sm:$0xff]   ;;  %v3600_v43 = vld [vmem:[%s5083_s2 + $0x2cc] ss:$16 sps:$4 sm:$0xff]   ;;  %v3604_v50 = vld [vmem:[%s5083_s2 + $0x2e8] ss:$16 sps:$4 sm:$0xff]  }
  0x24   : > { %v3607_v53 = vld [vmem:[%s5083_s2 + $0x300] ss:$16 sps:$4 sm:$0xff]   ;;  %v3615_v55 = vld [vmem:[%s5083_s2 + $0x324] ss:$16 sps:$4 sm:$0xff]   ;;  %v3648_v12 = vld [vmem:[%s5083_s2 + $0x3cc] ss:$16 sps:$4 sm:$0xff]  }
  0x25   : > { %1573 = vmatpush1.bf16.msra.mxu0 %v3509_v31  ;;  %1737 = vmatpush1.bf16.msra.mxu1 %v3510_v32  ;;  %v3582_v31 = vld [vmem:[%s5083_s2 + $0x26c] ss:$16 sps:$4 sm:$0xff]   ;;  %v3577_v32 = vld [vmem:[%s5083_s2 + $0x260] ss:$16 sps:$4 sm:$0xff]   ;;  %v3621_v59 = vld [vmem:[%s5083_s2 + $0x344] ss:$16 sps:$4 sm:$0xff]  }
  0x26   : > { %1574 = vmatprep.subr.bf16.mxu0 %v3511_v33  ;;  %1738 = vmatprep.subr.bf16.mxu1 %v3513_v34  ;;  %v3580_v33 = vld [vmem:[%s5083_s2 + $0x268] ss:$16 sps:$4 sm:$0xff]   ;;  %v3585_v34 = vld [vmem:[%s5083_s2 + $0x284] ss:$16 sps:$4 sm:$0xff]   ;;  %v3619_v61 = vld [vmem:[%s5083_s2 + $0x340] ss:$16 sps:$4 sm:$0xff]  }
  0x27   : > { %v3637_v9 = vld [vmem:[%s5083_s2 + $0x3a0] ss:$16 sps:$4 sm:$0xff]   ;;  %v3651_v15 = vld [vmem:[%s5083_s2 + $0x3e4] ss:$16 sps:$4 sm:$0xff]   ;;  %vm1554_vm0 = vcmask 130048   ;;  %vm2992_vm1 = vcmask 1040384  }
  0x28   : > { %vm3010_vm2 = vcmask 0  }
  0x29   : > { %1575 = vmatpush1.bf16.msra.mxu0 %v3515_v35  ;;  %1739 = vmatpush1.bf16.msra.mxu1 %v3516_v36  ;;  %v3588_v35 = vld [vmem:[%s5083_s2 + $0x28c] ss:$16 sps:$4 sm:$0xff]   ;;  %v3583_v36 = vld [vmem:[%s5083_s2 + $0x280] ss:$16 sps:$4 sm:$0xff]  }
  0x2a   : > { %1576 = vmatprep.subr.bf16.mxu0 %v3517_v40  ;;  %1740 = vmatprep.subr.bf16.mxu1 %v3519_v41  ;;  %v3589_v40 = vld [vmem:[%s5083_s2 + $0x2a0] ss:$16 sps:$4 sm:$0xff]   ;;  %v3592_v41 = vld [vmem:[%s5083_s2 + $0x2a8] ss:$16 sps:$4 sm:$0xff]  }
  0x2d   : > { %1577 = vmatpush1.bf16.msra.mxu0 %v3521_v42  ;;  %1741 = vmatpush1.bf16.msra.mxu1 %v3522_v45  ;;  %v3597_v42 = vld [vmem:[%s5083_s2 + $0x2c4] ss:$16 sps:$4 sm:$0xff]   ;;  %v3595_v45 = vld [vmem:[%s5083_s2 + $0x2c0] ss:$16 sps:$4 sm:$0xff]  }
  0x2e   : > { %1578 = vmatprep.subr.bf16.mxu0 %v3523_v46  ;;  %1742 = vmatprep.subr.bf16.mxu1 %v3525_v47  ;;  %v3598_v46 = vld [vmem:[%s5083_s2 + $0x2c8] ss:$16 sps:$4 sm:$0xff]   ;;  %v3603_v47 = vld [vmem:[%s5083_s2 + $0x2e4] ss:$16 sps:$4 sm:$0xff]  }
  0x31   : > { %1579 = vmatpush1.bf16.msra.mxu0 %v3527_v48  ;;  %1743 = vmatpush1.bf16.msra.mxu1 %v3528_v49  ;;  %v3606_v48 = vld [vmem:[%s5083_s2 + $0x2ec] ss:$16 sps:$4 sm:$0xff]   ;;  %v3601_v49 = vld [vmem:[%s5083_s2 + $0x2e0] ss:$16 sps:$4 sm:$0xff]  }
  0x32   : > { %1580 = vmatprep.subr.bf16.mxu0 %v3529_v51  ;;  %1744 = vmatprep.subr.bf16.mxu1 %v3531_v52  ;;  %v3609_v51 = vld [vmem:[%s5083_s2 + $0x304] ss:$16 sps:$4 sm:$0xff]   ;;  %v3612_v52 = vld [vmem:[%s5083_s2 + $0x30c] ss:$16 sps:$4 sm:$0xff]  }
  0x35   : > { %1581 = vmatpush1.bf16.msra.mxu0 %v3533_v54  ;;  %1745 = vmatpush1.bf16.msra.mxu1 %v3534_v56  ;;  %v3610_v54 = vld [vmem:[%s5083_s2 + $0x308] ss:$16 sps:$4 sm:$0xff]   ;;  %v3618_v56 = vld [vmem:[%s5083_s2 + $0x32c] ss:$16 sps:$4 sm:$0xff]  }
  0x36   : > { %1582 = vmatprep.subr.bf16.mxu0 %v3535_v57  ;;  %1746 = vmatprep.subr.bf16.mxu1 %v3537_v58  ;;  %v3613_v57 = vld [vmem:[%s5083_s2 + $0x320] ss:$16 sps:$4 sm:$0xff]   ;;  %v3616_v58 = vld [vmem:[%s5083_s2 + $0x328] ss:$16 sps:$4 sm:$0xff]  }
  0x39   : > { %1583 = vmatpush1.bf16.msra.mxu0 %v3539_v60  ;;  %1747 = vmatpush1.bf16.msra.mxu1 %v3540_v62  ;;  %v3624_v60 = vld [vmem:[%s5083_s2 + $0x34c] ss:$16 sps:$4 sm:$0xff]   ;;  %v3622_v62 = vld [vmem:[%s5083_s2 + $0x348] ss:$16 sps:$4 sm:$0xff]  }
  0x3a   : > { %1584 = vmatprep.subr.bf16.mxu0 %v3541_v63  ;;  %1748 = vmatprep.subr.bf16.mxu1 %v3543_v0  ;;  %v3627_v63 = vld [vmem:[%s5083_s2 + $0x364] ss:$16 sps:$4 sm:$0xff]   ;;  %v3630_v0 = vld [vmem:[%s5083_s2 + $0x36c] ss:$16 sps:$4 sm:$0xff]  }
  0x3d   : > { %1585 = vmatpush1.bf16.msra.mxu0 %v3545_v1  ;;  %1749 = vmatpush1.bf16.msra.mxu1 %v3546_v2  ;;  %v3625_v1 = vld [vmem:[%s5083_s2 + $0x360] ss:$16 sps:$4 sm:$0xff]   ;;  %v3628_v2 = vld [vmem:[%s5083_s2 + $0x368] ss:$16 sps:$4 sm:$0xff]  }
  0x3e   : > { %1586 = vmatprep.subr.bf16.mxu0 %v3547_v3  ;;  %1750 = vmatprep.subr.bf16.mxu1 %v3549_v4  ;;  %v3633_v3 = vld [vmem:[%s5083_s2 + $0x384] ss:$16 sps:$4 sm:$0xff]   ;;  %v3636_v4 = vld [vmem:[%s5083_s2 + $0x38c] ss:$16 sps:$4 sm:$0xff]  }
  0x41   : > { %1587 = vmatpush1.bf16.msra.mxu0 %v3551_v5  ;;  %1751 = vmatpush1.bf16.msra.mxu1 %v3552_v6  ;;  %v3631_v5 = vld [vmem:[%s5083_s2 + $0x380] ss:$16 sps:$4 sm:$0xff]   ;;  %v3634_v6 = vld [vmem:[%s5083_s2 + $0x388] ss:$16 sps:$4 sm:$0xff]  }
  0x42   : > { %1588 = vmatprep.subr.bf16.mxu0 %v3553_v7  ;;  %1752 = vmatprep.subr.bf16.mxu1 %v3555_v8  ;;  %v3639_v7 = vld [vmem:[%s5083_s2 + $0x3a4] ss:$16 sps:$4 sm:$0xff]   ;;  %v3642_v8 = vld [vmem:[%s5083_s2 + $0x3ac] ss:$16 sps:$4 sm:$0xff]  }
  0x45   : > { %1589 = vmatpush1.bf16.msra.mxu0 %v3557_v10  ;;  %1753 = vmatpush1.bf16.msra.mxu1 %v3558_v11  ;;  %v3640_v10 = vld [vmem:[%s5083_s2 + $0x3a8] ss:$16 sps:$4 sm:$0xff]   ;;  %v3645_v11 = vld [vmem:[%s5083_s2 + $0x3c4] ss:$16 sps:$4 sm:$0xff]  }
  0x46   : > { %1599 = vmatprep.subr.bf16.mxu0 %v3561_v13  ;;  %1763 = vmatprep.subr.bf16.mxu1 %v3564_v14  ;;  %v3643_v13 = vld [vmem:[%s5083_s2 + $0x3c0] ss:$16 sps:$4 sm:$0xff]   ;;  %v3646_v14 = vld [vmem:[%s5083_s2 + $0x3c8] ss:$16 sps:$4 sm:$0xff]  }
  0x48   : > { %1591 = vmatmul.mubr.bf16.vlgmr.msra.gmra.mrb[0].mxu0 %v4240_v17  ;;  %1755 = vmatmul.mubr.bf16.vlgmr.msra.gmra.mrb[0].mxu1 %v4240_v17 }
  0x49   : > { %1600 = vmatpush1.bf16.msra.mxu0 %v3559_v16  ;;  %1764 = vmatpush1.bf16.msra.mxu1 %v3562_v18  ;;  %v3654_v16 = vld [vmem:[%s5083_s2 + $0x3ec] ss:$16 sps:$4 sm:$0xff]   ;;  %v3649_v18 = vld [vmem:[%s5083_s2 + $0x3e0] ss:$16 sps:$4 sm:$0xff]  }
  0x4a   : > { %1601 = vmatprep.subr.bf16.mxu0 %v3567_v21  ;;  %1765 = vmatprep.subr.bf16.mxu1 %v3570_v22  ;;  %v3652_v21 = vld [vmem:[%s5083_s2 + $0x3e8] ss:$16 sps:$4 sm:$0xff]   ;;  %v3657_v22 = vld [vmem:[%s5083_s2 + $0x404] ss:$16 sps:$4 sm:$0xff]  }
  0x4b   : > { %1631 = vmatprep.mubr.bf16.mxu0 %v567_v23  ;;  %1795 = vmatprep.mubr.bf16.mxu1 %v567_v23  ;;  %v3660_v23 = vld [vmem:[%s5083_s2 + $0x40c] ss:$16 sps:$4 sm:$0xff]  }
  0x4d   : > { %1602 = vmatpush1.bf16.msra.mxu0 %v3565_v24  ;;  %1766 = vmatpush1.bf16.msra.mxu1 %v3568_v25  ;;  %v3655_v24 = vld [vmem:[%s5083_s2 + $0x400] ss:$16 sps:$4 sm:$0xff]   ;;  %v565_v25 = vcombine.high %v4240_v17, %v4240_v17 }
  0x4e   : > { %1603 = vmatprep.subr.bf16.mxu0 %v3573_v26  ;;  %1767 = vmatprep.subr.bf16.mxu1 %v3576_v27  ;;  %v3658_v26 = vld [vmem:[%s5083_s2 + $0x408] ss:$16 sps:$4 sm:$0xff]   ;;  %v3663_v27 = vld [vmem:[%s5083_s2 + $0x424] ss:$16 sps:$4 sm:$0xff]   ;;  %v3661_v17 = vld [vmem:[%s5083_s2 + $0x420] ss:$16 sps:$4 sm:$0xff]  }
  0x51   : > { %1604 = vmatpush1.bf16.msra.mxu0 %v3571_v28  ;;  %1768 = vmatpush1.bf16.msra.mxu1 %v3574_v29  ;;  %v3666_v28 = vld [vmem:[%s5083_s2 + $0x42c] ss:$16 sps:$4 sm:$0xff]   ;;  %v3664_v29 = vld [vmem:[%s5083_s2 + $0x428] ss:$16 sps:$4 sm:$0xff]  }
  0x52   : > { %1605 = vmatprep.subr.bf16.mxu0 %v3579_v30  ;;  %1769 = vmatprep.subr.bf16.mxu1 %v3582_v31  ;;  %v3669_v30 = vld [vmem:[%s5083_s2 + $0x444] ss:$16 sps:$4 sm:$0xff]   ;;  %v3672_v31 = vld [vmem:[%s5083_s2 + $0x44c] ss:$16 sps:$4 sm:$0xff]  }
  0x55   : > { %1606 = vmatpush1.bf16.msra.mxu0 %v3577_v32  ;;  %1770 = vmatpush1.bf16.msra.mxu1 %v3580_v33  ;;  %v3667_v32 = vld [vmem:[%s5083_s2 + $0x440] ss:$16 sps:$4 sm:$0xff]   ;;  %v3670_v33 = vld [vmem:[%s5083_s2 + $0x448] ss:$16 sps:$4 sm:$0xff]  }
  0x56   : > { %1607 = vmatprep.subr.bf16.mxu0 %v3585_v34  ;;  %1771 = vmatprep.subr.bf16.mxu1 %v3588_v35  ;;  %v3675_v34 = vld [vmem:[%s5083_s2 + $0x464] ss:$16 sps:$4 sm:$0xff]   ;;  %v3673_v35 = vld [vmem:[%s5083_s2 + $0x460] ss:$16 sps:$4 sm:$0xff]  }
  0x59   : > { %1608 = vmatpush1.bf16.msra.mxu0 %v3583_v36  ;;  %1772 = vmatpush1.bf16.msra.mxu1 %v3586_v37  ;;  %v3676_v36 = vld [vmem:[%s5083_s2 + $0x468] ss:$16 sps:$4 sm:$0xff]   ;;  %v3681_v37 = vld [vmem:[%s5083_s2 + $0x484] ss:$16 sps:$4 sm:$0xff]  }
  0x5a   : > { %1609 = vmatprep.subr.bf16.mxu0 %v3591_v38  ;;  %1773 = vmatprep.subr.bf16.mxu1 %v3594_v39  ;;  %v3684_v38 = vld [vmem:[%s5083_s2 + $0x48c] ss:$16 sps:$4 sm:$0xff]   ;;  %v3679_v39 = vld [vmem:[%s5083_s2 + $0x480] ss:$16 sps:$4 sm:$0xff]  }
  0x5d   : > { %1610 = vmatpush1.bf16.msra.mxu0 %v3589_v40  ;;  %1774 = vmatpush1.bf16.msra.mxu1 %v3592_v41  ;;  %v3682_v40 = vld [vmem:[%s5083_s2 + $0x488] ss:$16 sps:$4 sm:$0xff]   ;;  %v3687_v41 = vld [vmem:[%s5083_s2 + $0x4a4] ss:$16 sps:$4 sm:$0xff]  }
  0x5e   : > { %1611 = vmatprep.subr.bf16.mxu0 %v3597_v42  ;;  %1775 = vmatprep.subr.bf16.mxu1 %v3600_v43  ;;  %v3690_v42 = vld [vmem:[%s5083_s2 + $0x4ac] ss:$16 sps:$4 sm:$0xff]   ;;  %v3685_v43 = vld [vmem:[%s5083_s2 + $0x4a0] ss:$16 sps:$4 sm:$0xff]  }
  0x61   : > { %1612 = vmatpush1.bf16.msra.mxu0 %v3595_v45  ;;  %1776 = vmatpush1.bf16.msra.mxu1 %v3598_v46  ;;  %v3688_v45 = vld [vmem:[%s5083_s2 + $0x4a8] ss:$16 sps:$4 sm:$0xff]   ;;  %v3693_v46 = vld [vmem:[%s5083_s2 + $0x4c4] ss:$16 sps:$4 sm:$0xff]  }
  0x62   : > { %1613 = vmatprep.subr.bf16.mxu0 %v3603_v47  ;;  %1777 = vmatprep.subr.bf16.mxu1 %v3606_v48  ;;  %v3696_v47 = vld [vmem:[%s5083_s2 + $0x4cc] ss:$16 sps:$4 sm:$0xff]   ;;  %v3691_v48 = vld [vmem:[%s5083_s2 + $0x4c0] ss:$16 sps:$4 sm:$0xff]  }
  0x65   : > { %1614 = vmatpush1.bf16.msra.mxu0 %v3601_v49  ;;  %1778 = vmatpush1.bf16.msra.mxu1 %v3604_v50  ;;  %v3694_v49 = vld [vmem:[%s5083_s2 + $0x4c8] ss:$16 sps:$4 sm:$0xff]   ;;  %v3699_v50 = vld [vmem:[%s5083_s2 + $0x4e4] ss:$16 sps:$4 sm:$0xff]  }
  0x66   : > { %1615 = vmatprep.subr.bf16.mxu0 %v3609_v51  ;;  %1779 = vmatprep.subr.bf16.mxu1 %v3612_v52  ;;  %v3702_v51 = vld [vmem:[%s5083_s2 + $0x4ec] ss:$16 sps:$4 sm:$0xff]   ;;  %v3697_v52 = vld [vmem:[%s5083_s2 + $0x4e0] ss:$16 sps:$4 sm:$0xff]  }
  0x69   : > { %1616 = vmatpush1.bf16.msra.mxu0 %v3607_v53  ;;  %1780 = vmatpush1.bf16.msra.mxu1 %v3610_v54  ;;  %v3700_v53 = vld [vmem:[%s5083_s2 + $0x4e8] ss:$16 sps:$4 sm:$0xff]   ;;  %v3705_v54 = vld [vmem:[%s5083_s2 + $0x504] ss:$16 sps:$4 sm:$0xff]  }
  0x6a   : > { %1617 = vmatprep.subr.bf16.mxu0 %v3615_v55  ;;  %1781 = vmatprep.subr.bf16.mxu1 %v3618_v56  ;;  %v3708_v55 = vld [vmem:[%s5083_s2 + $0x50c] ss:$16 sps:$4 sm:$0xff]   ;;  %v3703_v56 = vld [vmem:[%s5083_s2 + $0x500] ss:$16 sps:$4 sm:$0xff]  }
  0x6d   : > { %1618 = vmatpush1.bf16.msra.mxu0 %v3613_v57  ;;  %1782 = vmatpush1.bf16.msra.mxu1 %v3616_v58  ;;  %v3706_v57 = vld [vmem:[%s5083_s2 + $0x508] ss:$16 sps:$4 sm:$0xff]   ;;  %v3711_v58 = vld [vmem:[%s5083_s2 + $0x524] ss:$16 sps:$4 sm:$0xff]  }
  0x6e   : > { %1619 = vmatprep.subr.bf16.mxu0 %v3621_v59  ;;  %1783 = vmatprep.subr.bf16.mxu1 %v3624_v60  ;;  %v3714_v59 = vld [vmem:[%s5083_s2 + $0x52c] ss:$16 sps:$4 sm:$0xff]   ;;  %v3709_v60 = vld [vmem:[%s5083_s2 + $0x520] ss:$16 sps:$4 sm:$0xff]  }
  0x71   : > { %1620 = vmatpush1.bf16.msra.mxu0 %v3619_v61  ;;  %1784 = vmatpush1.bf16.msra.mxu1 %v3622_v62  ;;  %v3712_v61 = vld [vmem:[%s5083_s2 + $0x528] ss:$16 sps:$4 sm:$0xff]   ;;  %v3717_v62 = vld [vmem:[%s5083_s2 + $0x544] ss:$16 sps:$4 sm:$0xff]  }
  0x72   : > { %1621 = vmatprep.subr.bf16.mxu0 %v3627_v63  ;;  %1785 = vmatprep.subr.bf16.mxu1 %v3630_v0  ;;  %v3720_v63 = vld [vmem:[%s5083_s2 + $0x54c] ss:$16 sps:$4 sm:$0xff]   ;;  %v3715_v0 = vld [vmem:[%s5083_s2 + $0x540] ss:$16 sps:$4 sm:$0xff]  }
  0x75   : > { %1622 = vmatpush1.bf16.msra.mxu0 %v3625_v1  ;;  %1786 = vmatpush1.bf16.msra.mxu1 %v3628_v2  ;;  %v3718_v1 = vld [vmem:[%s5083_s2 + $0x548] ss:$16 sps:$4 sm:$0xff]   ;;  %v3723_v2 = vld [vmem:[%s5083_s2 + $0x564] ss:$16 sps:$4 sm:$0xff]  }
  0x76   : > { %1623 = vmatprep.subr.bf16.mxu0 %v3633_v3  ;;  %1787 = vmatprep.subr.bf16.mxu1 %v3636_v4  ;;  %v3726_v3 = vld [vmem:[%s5083_s2 + $0x56c] ss:$16 sps:$4 sm:$0xff]   ;;  %v3721_v4 = vld [vmem:[%s5083_s2 + $0x560] ss:$16 sps:$4 sm:$0xff]  }
  0x79   : > { %1624 = vmatpush1.bf16.msra.mxu0 %v3631_v5  ;;  %1788 = vmatpush1.bf16.msra.mxu1 %v3634_v6  ;;  %v3724_v5 = vld [vmem:[%s5083_s2 + $0x568] ss:$16 sps:$4 sm:$0xff]   ;;  %v3729_v6 = vld [vmem:[%s5083_s2 + $0x584] ss:$16 sps:$4 sm:$0xff]  }
  0x7a   : > { %1625 = vmatprep.subr.bf16.mxu0 %v3639_v7  ;;  %1789 = vmatprep.subr.bf16.mxu1 %v3642_v8  ;;  %v3732_v7 = vld [vmem:[%s5083_s2 + $0x58c] ss:$16 sps:$4 sm:$0xff]   ;;  %v3727_v8 = vld [vmem:[%s5083_s2 + $0x580] ss:$16 sps:$4 sm:$0xff]  }
  0x7d   : > { %1626 = vmatpush1.bf16.msra.mxu0 %v3637_v9  ;;  %1790 = vmatpush1.bf16.msra.mxu1 %v3640_v10  ;;  %v3730_v9 = vld [vmem:[%s5083_s2 + $0x588] ss:$16 sps:$4 sm:$0xff]   ;;  %v3735_v10 = vld [vmem:[%s5083_s2 + $0x5a4] ss:$16 sps:$4 sm:$0xff]  }
  0x7e   : > { %1627 = vmatprep.subr.bf16.mxu0 %v3645_v11  ;;  %1791 = vmatprep.subr.bf16.mxu1 %v3648_v12  ;;  %v3738_v11 = vld [vmem:[%s5083_s2 + $0x5ac] ss:$16 sps:$4 sm:$0xff]   ;;  %v3733_v12 = vld [vmem:[%s5083_s2 + $0x5a0] ss:$16 sps:$4 sm:$0xff]  }
  0x81   : > { %1628 = vmatpush1.bf16.msra.mxu0 %v3643_v13  ;;  %1792 = vmatpush1.bf16.msra.mxu1 %v3646_v14  ;;  %v3736_v13 = vld [vmem:[%s5083_s2 + $0x5a8] ss:$16 sps:$4 sm:$0xff]   ;;  %v3741_v14 = vld [vmem:[%s5083_s2 + $0x5c4] ss:$16 sps:$4 sm:$0xff]  }
  0x82   : > { %1629 = vmatprep.subr.bf16.mxu0 %v3651_v15  ;;  %1793 = vmatprep.subr.bf16.mxu1 %v3654_v16  ;;  %v3744_v15 = vld [vmem:[%s5083_s2 + $0x5cc] ss:$16 sps:$4 sm:$0xff]   ;;  %v3739_v16 = vld [vmem:[%s5083_s2 + $0x5c0] ss:$16 sps:$4 sm:$0xff]  }
  0x85   : > { %1630 = vmatpush1.bf16.msra.mxu0 %v3649_v18  ;;  %1794 = vmatpush1.bf16.msra.mxu1 %v3652_v21  ;;  %v3742_v18 = vld [vmem:[%s5083_s2 + $0x5c8] ss:$16 sps:$4 sm:$0xff]   ;;  %v3747_v21 = vld [vmem:[%s5083_s2 + $0x5e4] ss:$16 sps:$4 sm:$0xff]  }
  0x86   : > { %1640 = vmatprep.subr.bf16.mxu0 %v3657_v22  ;;  %1804 = vmatprep.subr.bf16.mxu1 %v3660_v23  ;;  %v3750_v22 = vld [vmem:[%s5083_s2 + $0x5ec] ss:$16 sps:$4 sm:$0xff]   ;;  %v3745_v23 = vld [vmem:[%s5083_s2 + $0x5e0] ss:$16 sps:$4 sm:$0xff]  }
  0x88   : > { %1632 = vmatmul.mubr.bf16.vlgmr.msra.gmra.mrb[0].mxu0 %v565_v25  ;;  %1796 = vmatmul.mubr.bf16.vlgmr.msra.gmra.mrb[0].mxu1 %v565_v25  ;;  %v3754_v25 = vld [vmem:[%s5083_s2 + $0x604] ss:$16 sps:$4 sm:$0xff]  }
  0x89   : > { %1641 = vmatpush1.bf16.msra.mxu0 %v3655_v24  ;;  %1805 = vmatpush1.bf16.msra.mxu1 %v3658_v26  ;;  %v3748_v24 = vld [vmem:[%s5083_s2 + $0x5e8] ss:$16 sps:$4 sm:$0xff]   ;;  %v3757_v26 = vld [vmem:[%s5083_s2 + $0x60c] ss:$16 sps:$4 sm:$0xff]  }
  0x8a   : > { %1642 = vmatprep.subr.bf16.mxu0 %v3663_v27  ;;  %1806 = vmatprep.subr.bf16.mxu1 %v3666_v28  ;;  %v3752_v27 = vld [vmem:[%s5083_s2 + $0x600] ss:$16 sps:$4 sm:$0xff]   ;;  %v3755_v28 = vld [vmem:[%s5083_s2 + $0x608] ss:$16 sps:$4 sm:$0xff]  }
  0x8b   : > { %1672 = vmatprep.mubr.bf16.mxu0 %v4245_v19  ;;  %1836 = vmatprep.mubr.bf16.mxu1 %v4245_v19  ;;  %v3678_v19 = vld [vmem:[%s5083_s2 + $0x46c] ss:$16 sps:$4 sm:$0xff]  }
  0x8d   : > { %1643 = vmatpush1.bf16.msra.mxu0 %v3661_v17  ;;  %1807 = vmatpush1.bf16.msra.mxu1 %v3664_v29  ;;  %v3760_v17 = vld [vmem:[%s5084_s3 + $0x4] ss:$16 sps:$4 sm:$0xff]   ;;  %v3763_v29 = vld [vmem:[%s5084_s3 + $0xc] ss:$16 sps:$4 sm:$0xff]  }
  0x8e   : > { %1644 = vmatprep.subr.bf16.mxu0 %v3669_v30  ;;  %1808 = vmatprep.subr.bf16.mxu1 %v3672_v31  ;;  %v3969_v30 = vmov 0   ;;  %v3758_v31 = vld [vmem:[%s5084_s3] ss:$16 sps:$4 sm:$0xff]  }
  0x91   : > { %1645 = vmatpush1.bf16.msra.mxu0 %v3667_v32  ;;  %1809 = vmatpush1.bf16.msra.mxu1 %v3670_v33  ;;  %v566_v32 = vcombine.high %v4247_v20, %v4247_v20  ;;  %v3761_v33 = vld [vmem:[%s5084_s3 + $0x8] ss:$16 sps:$4 sm:$0xff]  }
  0x92   : > { %1646 = vmatprep.subr.bf16.mxu0 %v3675_v34  ;;  %1810 = vmatprep.subr.bf16.mxu1 %v3678_v19  ;;  %v3766_v34 = vld [vmem:[%s5084_s3 + $0x24] ss:$16 sps:$4 sm:$0xff]   ;;  %v3769_v19 = vld [vmem:[%s5084_s3 + $0x2c] ss:$16 sps:$4 sm:$0xff]  }
  0x95   : > { %1647 = vmatpush1.bf16.msra.mxu0 %v3673_v35  ;;  %1811 = vmatpush1.bf16.msra.mxu1 %v3676_v36  ;;  %v3856_v35 = vld [vmem:[%s4583_s7 + $0x4] ss:$16 sps:$4 sm:$0xff]   ;;  %v3767_v36 = vld [vmem:[%s5084_s3 + $0x28] ss:$16 sps:$4 sm:$0xff]  }
  0x96   : > { %1648 = vmatprep.subr.bf16.mxu0 %v3681_v37  ;;  %1812 = vmatprep.subr.bf16.mxu1 %v3684_v38  ;;  %v3772_v37 = vld [vmem:[%s5084_s3 + $0x44] ss:$16 sps:$4 sm:$0xff]   ;;  %v3775_v38 = vld [vmem:[%s5084_s3 + $0x4c] ss:$16 sps:$4 sm:$0xff]  }
  0x99   : > { %1649 = vmatpush1.bf16.msra.mxu0 %v3679_v39  ;;  %1813 = vmatpush1.bf16.msra.mxu1 %v3682_v40  ;;  %v3770_v39 = vld [vmem:[%s5084_s3 + $0x40] ss:$16 sps:$4 sm:$0xff]   ;;  %v3773_v40 = vld [vmem:[%s5084_s3 + $0x48] ss:$16 sps:$4 sm:$0xff]  }
  0x9a   : > { %1650 = vmatprep.subr.bf16.mxu0 %v3687_v41  ;;  %1814 = vmatprep.subr.bf16.mxu1 %v3690_v42  ;;  %v3778_v41 = vld [vmem:[%s5084_s3 + $0x64] ss:$16 sps:$4 sm:$0xff]   ;;  %v3781_v42 = vld [vmem:[%s5084_s3 + $0x6c] ss:$16 sps:$4 sm:$0xff]  }
  0x9d   : > { %1651 = vmatpush1.bf16.msra.mxu0 %v3685_v43  ;;  %1815 = vmatpush1.bf16.msra.mxu1 %v3688_v45  ;;  %v3776_v43 = vld [vmem:[%s5084_s3 + $0x60] ss:$16 sps:$4 sm:$0xff]   ;;  %v3779_v45 = vld [vmem:[%s5084_s3 + $0x68] ss:$16 sps:$4 sm:$0xff]  }
  0x9e   : > { %1652 = vmatprep.subr.bf16.mxu0 %v3693_v46  ;;  %1816 = vmatprep.subr.bf16.mxu1 %v3696_v47  ;;  %v3784_v46 = vld [vmem:[%s5084_s3 + $0x84] ss:$16 sps:$4 sm:$0xff]   ;;  %v3787_v47 = vld [vmem:[%s5084_s3 + $0x8c] ss:$16 sps:$4 sm:$0xff]  }
  0xa1   : > { %1653 = vmatpush1.bf16.msra.mxu0 %v3691_v48  ;;  %1817 = vmatpush1.bf16.msra.mxu1 %v3694_v49  ;;  %v3782_v48 = vld [vmem:[%s5084_s3 + $0x80] ss:$16 sps:$4 sm:$0xff]   ;;  %v3785_v49 = vld [vmem:[%s5084_s3 + $0x88] ss:$16 sps:$4 sm:$0xff]  }
  0xa2   : > { %1654 = vmatprep.subr.bf16.mxu0 %v3699_v50  ;;  %1818 = vmatprep.subr.bf16.mxu1 %v3702_v51  ;;  %v3790_v50 = vld [vmem:[%s5084_s3 + $0xa4] ss:$16 sps:$4 sm:$0xff]   ;;  %v3793_v51 = vld [vmem:[%s5084_s3 + $0xac] ss:$16 sps:$4 sm:$0xff]  }
  0xa5   : > { %1655 = vmatpush1.bf16.msra.mxu0 %v3697_v52  ;;  %1819 = vmatpush1.bf16.msra.mxu1 %v3700_v53  ;;  %v3788_v52 = vld [vmem:[%s5084_s3 + $0xa0] ss:$16 sps:$4 sm:$0xff]   ;;  %v3791_v53 = vld [vmem:[%s5084_s3 + $0xa8] ss:$16 sps:$4 sm:$0xff]  }
  0xa6   : > { %1656 = vmatprep.subr.bf16.mxu0 %v3705_v54  ;;  %1820 = vmatprep.subr.bf16.mxu1 %v3708_v55  ;;  %v3796_v54 = vld [vmem:[%s5084_s3 + $0xc4] ss:$16 sps:$4 sm:$0xff]   ;;  %v3799_v55 = vld [vmem:[%s5084_s3 + $0xcc] ss:$16 sps:$4 sm:$0xff]  }
  0xa9   : > { %1657 = vmatpush1.bf16.msra.mxu0 %v3703_v56  ;;  %1821 = vmatpush1.bf16.msra.mxu1 %v3706_v57  ;;  %v3794_v56 = vld [vmem:[%s5084_s3 + $0xc0] ss:$16 sps:$4 sm:$0xff]   ;;  %v3797_v57 = vld [vmem:[%s5084_s3 + $0xc8] ss:$16 sps:$4 sm:$0xff]  }
  0xaa   : > { %1658 = vmatprep.subr.bf16.mxu0 %v3711_v58  ;;  %1822 = vmatprep.subr.bf16.mxu1 %v3714_v59  ;;  %v3802_v58 = vld [vmem:[%s5084_s3 + $0xe4] ss:$16 sps:$4 sm:$0xff]   ;;  %v3805_v59 = vld [vmem:[%s5084_s3 + $0xec] ss:$16 sps:$4 sm:$0xff]  }
  0xad   : > { %1659 = vmatpush1.bf16.msra.mxu0 %v3709_v60  ;;  %1823 = vmatpush1.bf16.msra.mxu1 %v3712_v61  ;;  %v3800_v60 = vld [vmem:[%s5084_s3 + $0xe0] ss:$16 sps:$4 sm:$0xff]   ;;  %v3803_v61 = vld [vmem:[%s5084_s3 + $0xe8] ss:$16 sps:$4 sm:$0xff]  }
  0xae   : > { %1660 = vmatprep.subr.bf16.mxu0 %v3717_v62  ;;  %1824 = vmatprep.subr.bf16.mxu1 %v3720_v63  ;;  %v3808_v62 = vld [vmem:[%s5084_s3 + $0x104] ss:$16 sps:$4 sm:$0xff]   ;;  %v3811_v63 = vld [vmem:[%s5084_s3 + $0x10c] ss:$16 sps:$4 sm:$0xff]  }
  0xb1   : > { %1661 = vmatpush1.bf16.msra.mxu0 %v3715_v0  ;;  %1825 = vmatpush1.bf16.msra.mxu1 %v3718_v1  ;;  %v3806_v0 = vld [vmem:[%s5084_s3 + $0x100] ss:$16 sps:$4 sm:$0xff]   ;;  %v3809_v1 = vld [vmem:[%s5084_s3 + $0x108] ss:$16 sps:$4 sm:$0xff]  }
  0xb2   : > { %1662 = vmatprep.subr.bf16.mxu0 %v3723_v2  ;;  %1826 = vmatprep.subr.bf16.mxu1 %v3726_v3  ;;  %v3814_v2 = vld [vmem:[%s5084_s3 + $0x124] ss:$16 sps:$4 sm:$0xff]   ;;  %v3817_v3 = vld [vmem:[%s5084_s3 + $0x12c] ss:$16 sps:$4 sm:$0xff]  }
  0xb5   : > { %1663 = vmatpush1.bf16.msra.mxu0 %v3721_v4  ;;  %1827 = vmatpush1.bf16.msra.mxu1 %v3724_v5  ;;  %v3812_v4 = vld [vmem:[%s5084_s3 + $0x120] ss:$16 sps:$4 sm:$0xff]   ;;  %v3815_v5 = vld [vmem:[%s5084_s3 + $0x128] ss:$16 sps:$4 sm:$0xff]  }
  0xb6   : > { %1664 = vmatprep.subr.bf16.mxu0 %v3729_v6  ;;  %1828 = vmatprep.subr.bf16.mxu1 %v3732_v7  ;;  %v3820_v6 = vld [vmem:[%s5084_s3 + $0x144] ss:$16 sps:$4 sm:$0xff]   ;;  %v3823_v7 = vld [vmem:[%s5084_s3 + $0x14c] ss:$16 sps:$4 sm:$0xff]  }
  0xb9   : > { %1665 = vmatpush1.bf16.msra.mxu0 %v3727_v8  ;;  %1829 = vmatpush1.bf16.msra.mxu1 %v3730_v9  ;;  %v3818_v8 = vld [vmem:[%s5084_s3 + $0x140] ss:$16 sps:$4 sm:$0xff]   ;;  %v3821_v9 = vld [vmem:[%s5084_s3 + $0x148] ss:$16 sps:$4 sm:$0xff]  }
  0xba   : > { %1666 = vmatprep.subr.bf16.mxu0 %v3735_v10  ;;  %1830 = vmatprep.subr.bf16.mxu1 %v3738_v11  ;;  %v3826_v10 = vld [vmem:[%s5084_s3 + $0x164] ss:$16 sps:$4 sm:$0xff]   ;;  %v3829_v11 = vld [vmem:[%s5084_s3 + $0x16c] ss:$16 sps:$4 sm:$0xff]  }
  0xbd   : > { %1667 = vmatpush1.bf16.msra.mxu0 %v3733_v12  ;;  %1831 = vmatpush1.bf16.msra.mxu1 %v3736_v13  ;;  %v3824_v12 = vld [vmem:[%s5084_s3 + $0x160] ss:$16 sps:$4 sm:$0xff]   ;;  %v3827_v13 = vld [vmem:[%s5084_s3 + $0x168] ss:$16 sps:$4 sm:$0xff]  }
  0xbe   : > { %1668 = vmatprep.subr.bf16.mxu0 %v3741_v14  ;;  %1832 = vmatprep.subr.bf16.mxu1 %v3744_v15  ;;  %v3832_v14 = vld [vmem:[%s5084_s3 + $0x184] ss:$16 sps:$4 sm:$0xff]   ;;  %v3835_v15 = vld [vmem:[%s5084_s3 + $0x18c] ss:$16 sps:$4 sm:$0xff]  }
  0xc1   : > { %1669 = vmatpush1.bf16.msra.mxu0 %v3739_v16  ;;  %1833 = vmatpush1.bf16.msra.mxu1 %v3742_v18  ;;  %v3830_v16 = vld [vmem:[%s5084_s3 + $0x180] ss:$16 sps:$4 sm:$0xff]   ;;  %v3833_v18 = vld [vmem:[%s5084_s3 + $0x188] ss:$16 sps:$4 sm:$0xff]  }
  0xc2   : > { %1670 = vmatprep.subr.bf16.mxu0 %v3747_v21  ;;  %1834 = vmatprep.subr.bf16.mxu1 %v3750_v22  ;;  %v3838_v21 = vld [vmem:[%s5084_s3 + $0x1a4] ss:$16 sps:$4 sm:$0xff]   ;;  %v3841_v22 = vld [vmem:[%s5084_s3 + $0x1ac] ss:$16 sps:$4 sm:$0xff]  }
  0xc5   : > { %1671 = vmatpush1.bf16.msra.mxu0 %v3745_v23  ;;  %1835 = vmatpush1.bf16.msra.mxu1 %v3748_v24  ;;  %v3836_v23 = vld [vmem:[%s5084_s3 + $0x1a0] ss:$16 sps:$4 sm:$0xff]   ;;  %v3839_v24 = vld [vmem:[%s5084_s3 + $0x1a8] ss:$16 sps:$4 sm:$0xff]  }
  0xc6   : > { %1681 = vmatprep.subr.bf16.mxu0 %v3754_v25  ;;  %1845 = vmatprep.subr.bf16.mxu1 %v3757_v26  ;;  %v3844_v25 = vld [vmem:[%s5084_s3 + $0x1c4] ss:$16 sps:$4 sm:$0xff]   ;;  %v3847_v26 = vld [vmem:[%s5084_s3 + $0x1cc] ss:$16 sps:$4 sm:$0xff]  }
  0xc8   : > { %1673 = vmatmul.mubr.bf16.vlgmr.msra.gmra.mrb[0].mxu0 %v4247_v20  ;;  %1837 = vmatmul.mubr.bf16.vlgmr.msra.gmra.mrb[0].mxu1 %v4247_v20  ;;  %v3764_v20 = vld [vmem:[%s5084_s3 + $0x20] ss:$16 sps:$4 sm:$0xff]  }
  0xc9   : > { %1682 = vmatpush1.bf16.msra.mxu0 %v3752_v27  ;;  %1846 = vmatpush1.bf16.msra.mxu1 %v3755_v28  ;;  %v3842_v27 = vld [vmem:[%s5084_s3 + $0x1c0] ss:$16 sps:$4 sm:$0xff]   ;;  %v3845_v28 = vld [vmem:[%s5084_s3 + $0x1c8] ss:$16 sps:$4 sm:$0xff]  }
  0xca   : > { %1713 = vmatprep.mubr.bf16.mxu0 %v3969_v30  ;;  %1877 = vmatprep.mubr.bf16.mxu1 %v3969_v30  ;;  %v3848_v30 = vld [vmem:[%s5084_s3 + $0x1e0] ss:$16 sps:$4 sm:$0xff]  }
  0xcb   : > { %2694 = vmatprep.subr.bf16.mxu0 %v3760_v17  ;;  %2780 = vmatprep.subr.bf16.mxu1 %v3763_v29  ;;  %v3850_v17 = vld [vmem:[%s5084_s3 + $0x1e4] ss:$16 sps:$4 sm:$0xff]   ;;  %v3853_v29 = vld [vmem:[%s5084_s3 + $0x1ec] ss:$16 sps:$4 sm:$0xff]  }
  0xd4   : > { %3274 = vmatmul.mubr.msk.bf16.vlgmr.msra.gmra.mrb[0].mxu0 %vm1554_vm0, %v566_v32  ;;  %3275 = vmatmul.mubr.msk.bf16.vlgmr.msra.gmra.mrb[0].mxu1 %vm1554_vm0, %v566_v32  ;;  %v3859_v32 = vld [vmem:[%s5084_s3 + $0x204] ss:$16 sps:$4 sm:$0xff]  }
  0xd5   : > { %2695 = vmatpush1.bf16.msra.mxu0 %v3758_v31  ;;  %2781 = vmatpush1.bf16.msra.mxu1 %v3761_v33  ;;  %v3851_v31 = vld [vmem:[%s5084_s3 + $0x1e8] ss:$16 sps:$4 sm:$0xff]   ;;  %v3862_v33 = vld [vmem:[%s5084_s3 + $0x20c] ss:$16 sps:$4 sm:$0xff]  }
  0xd6   : > { %2696 = vmatprep.subr.bf16.mxu0 %v3766_v34  ;;  %2782 = vmatprep.subr.bf16.mxu1 %v3769_v19  ;;  %v3854_v34 = vld [vmem:[%s4583_s7] ss:$16 sps:$4 sm:$0xff]  }
  0xd7   : > { %2726 = vmatprep.mubr.bf16.mxu0 %v3856_v35  ;;  %2812 = vmatprep.mubr.bf16.mxu1 %v3856_v35  ;;  %v3857_v19 = vld [vmem:[%s5084_s3 + $0x200] ss:$16 sps:$4 sm:$0xff]   ;;  %v3860_v35 = vld [vmem:[%s5084_s3 + $0x208] ss:$16 sps:$4 sm:$0xff]  }
  0xd9   : > { %2697 = vmatpush1.bf16.msra.mxu0 %v3764_v20  ;;  %2783 = vmatpush1.bf16.msra.mxu1 %v3767_v36  ;;  %v3865_v20 = vld [vmem:[%s5084_s3 + $0x224] ss:$16 sps:$4 sm:$0xff]   ;;  %v3868_v36 = vld [vmem:[%s5084_s3 + $0x22c] ss:$16 sps:$4 sm:$0xff]  }
  0xda   : > { %2698 = vmatprep.subr.bf16.mxu0 %v3772_v37  ;;  %2784 = vmatprep.subr.bf16.mxu1 %v3775_v38  ;;  %v3955_v37 = vld [vmem:[%s4583_s7 + $0xc] ss:$16 sps:$4 sm:$0xff]   ;;  %v3863_v38 = vld [vmem:[%s5084_s3 + $0x220] ss:$16 sps:$4 sm:$0xff]  }
  0xdd   : > { %2699 = vmatpush1.bf16.msra.mxu0 %v3770_v39  ;;  %2785 = vmatpush1.bf16.msra.mxu1 %v3773_v40  ;;  %v3866_v39 = vld [vmem:[%s5084_s3 + $0x228] ss:$16 sps:$4 sm:$0xff]   ;;  %v3871_v40 = vld [vmem:[%s5084_s3 + $0x244] ss:$16 sps:$4 sm:$0xff]  }
  0xde   : > { %2700 = vmatprep.subr.bf16.mxu0 %v3778_v41  ;;  %2786 = vmatprep.subr.bf16.mxu1 %v3781_v42  ;;  %v3874_v41 = vld [vmem:[%s5084_s3 + $0x24c] ss:$16 sps:$4 sm:$0xff]   ;;  %v3869_v42 = vld [vmem:[%s5084_s3 + $0x240] ss:$16 sps:$4 sm:$0xff]  }
  0xe1   : > { %2701 = vmatpush1.bf16.msra.mxu0 %v3776_v43  ;;  %2787 = vmatpush1.bf16.msra.mxu1 %v3779_v45  ;;  %v3872_v43 = vld [vmem:[%s5084_s3 + $0x248] ss:$16 sps:$4 sm:$0xff]   ;;  %v3877_v45 = vld [vmem:[%s5084_s3 + $0x264] ss:$16 sps:$4 sm:$0xff]  }
  0xe2   : > { %2702 = vmatprep.subr.bf16.mxu0 %v3784_v46  ;;  %2788 = vmatprep.subr.bf16.mxu1 %v3787_v47  ;;  %v3880_v46 = vld [vmem:[%s5084_s3 + $0x26c] ss:$16 sps:$4 sm:$0xff]   ;;  %v3875_v47 = vld [vmem:[%s5084_s3 + $0x260] ss:$16 sps:$4 sm:$0xff]  }
  0xe5   : > { %2703 = vmatpush1.bf16.msra.mxu0 %v3782_v48  ;;  %2789 = vmatpush1.bf16.msra.mxu1 %v3785_v49  ;;  %v3878_v48 = vld [vmem:[%s5084_s3 + $0x268] ss:$16 sps:$4 sm:$0xff]   ;;  %v3883_v49 = vld [vmem:[%s5084_s3 + $0x284] ss:$16 sps:$4 sm:$0xff]  }
  0xe6   : > { %2704 = vmatprep.subr.bf16.mxu0 %v3790_v50  ;;  %2790 = vmatprep.subr.bf16.mxu1 %v3793_v51  ;;  %v3886_v50 = vld [vmem:[%s5084_s3 + $0x28c] ss:$16 sps:$4 sm:$0xff]   ;;  %v3881_v51 = vld [vmem:[%s5084_s3 + $0x280] ss:$16 sps:$4 sm:$0xff]  }
  0xe9   : > { %2705 = vmatpush1.bf16.msra.mxu0 %v3788_v52  ;;  %2791 = vmatpush1.bf16.msra.mxu1 %v3791_v53  ;;  %v3884_v52 = vld [vmem:[%s5084_s3 + $0x288] ss:$16 sps:$4 sm:$0xff]   ;;  %v3889_v53 = vld [vmem:[%s5084_s3 + $0x2a4] ss:$16 sps:$4 sm:$0xff]  }
  0xea   : > { %2706 = vmatprep.subr.bf16.mxu0 %v3796_v54  ;;  %2792 = vmatprep.subr.bf16.mxu1 %v3799_v55  ;;  %v3892_v54 = vld [vmem:[%s5084_s3 + $0x2ac] ss:$16 sps:$4 sm:$0xff]   ;;  %v3887_v55 = vld [vmem:[%s5084_s3 + $0x2a0] ss:$16 sps:$4 sm:$0xff]  }
  0xed   : > { %2707 = vmatpush1.bf16.msra.mxu0 %v3794_v56  ;;  %2793 = vmatpush1.bf16.msra.mxu1 %v3797_v57  ;;  %v3890_v56 = vld [vmem:[%s5084_s3 + $0x2a8] ss:$16 sps:$4 sm:$0xff]   ;;  %v3895_v57 = vld [vmem:[%s5084_s3 + $0x2c4] ss:$16 sps:$4 sm:$0xff]  }
  0xee   : > { %2708 = vmatprep.subr.bf16.mxu0 %v3802_v58  ;;  %2794 = vmatprep.subr.bf16.mxu1 %v3805_v59  ;;  %v3898_v58 = vld [vmem:[%s5084_s3 + $0x2cc] ss:$16 sps:$4 sm:$0xff]   ;;  %v3893_v59 = vld [vmem:[%s5084_s3 + $0x2c0] ss:$16 sps:$4 sm:$0xff]  }
  0xf1   : > { %2709 = vmatpush1.bf16.msra.mxu0 %v3800_v60  ;;  %2795 = vmatpush1.bf16.msra.mxu1 %v3803_v61  ;;  %v3896_v60 = vld [vmem:[%s5084_s3 + $0x2c8] ss:$16 sps:$4 sm:$0xff]   ;;  %v3901_v61 = vld [vmem:[%s5084_s3 + $0x2e4] ss:$16 sps:$4 sm:$0xff]  }
  0xf2   : > { %2710 = vmatprep.subr.bf16.mxu0 %v3808_v62  ;;  %2796 = vmatprep.subr.bf16.mxu1 %v3811_v63  ;;  %v3904_v62 = vld [vmem:[%s5084_s3 + $0x2ec] ss:$16 sps:$4 sm:$0xff]   ;;  %v3899_v63 = vld [vmem:[%s5084_s3 + $0x2e0] ss:$16 sps:$4 sm:$0xff]  }
  0xf5   : > { %2711 = vmatpush1.bf16.msra.mxu0 %v3806_v0  ;;  %2797 = vmatpush1.bf16.msra.mxu1 %v3809_v1  ;;  %v3902_v0 = vld [vmem:[%s5084_s3 + $0x2e8] ss:$16 sps:$4 sm:$0xff]   ;;  %v3907_v1 = vld [vmem:[%s5084_s3 + $0x304] ss:$16 sps:$4 sm:$0xff]  }
  0xf6   : > { %2712 = vmatprep.subr.bf16.mxu0 %v3814_v2  ;;  %2798 = vmatprep.subr.bf16.mxu1 %v3817_v3  ;;  %v3910_v2 = vld [vmem:[%s5084_s3 + $0x30c] ss:$16 sps:$4 sm:$0xff]   ;;  %v3905_v3 = vld [vmem:[%s5084_s3 + $0x300] ss:$16 sps:$4 sm:$0xff]  }
  0xf9   : > { %2713 = vmatpush1.bf16.msra.mxu0 %v3812_v4  ;;  %2799 = vmatpush1.bf16.msra.mxu1 %v3815_v5  ;;  %v3908_v4 = vld [vmem:[%s5084_s3 + $0x308] ss:$16 sps:$4 sm:$0xff]   ;;  %v3913_v5 = vld [vmem:[%s5084_s3 + $0x324] ss:$16 sps:$4 sm:$0xff]  }
  0xfa   : > { %2714 = vmatprep.subr.bf16.mxu0 %v3820_v6  ;;  %2800 = vmatprep.subr.bf16.mxu1 %v3823_v7  ;;  %v3916_v6 = vld [vmem:[%s5084_s3 + $0x32c] ss:$16 sps:$4 sm:$0xff]   ;;  %v3911_v7 = vld [vmem:[%s5084_s3 + $0x320] ss:$16 sps:$4 sm:$0xff]  }
  0xfd   : > { %2715 = vmatpush1.bf16.msra.mxu0 %v3818_v8  ;;  %2801 = vmatpush1.bf16.msra.mxu1 %v3821_v9  ;;  %v3914_v8 = vld [vmem:[%s5084_s3 + $0x328] ss:$16 sps:$4 sm:$0xff]   ;;  %v3919_v9 = vld [vmem:[%s5084_s3 + $0x344] ss:$16 sps:$4 sm:$0xff]  }
  0xfe   : > { %2716 = vmatprep.subr.bf16.mxu0 %v3826_v10  ;;  %2802 = vmatprep.subr.bf16.mxu1 %v3829_v11  ;;  %v3922_v10 = vld [vmem:[%s5084_s3 + $0x34c] ss:$16 sps:$4 sm:$0xff]   ;;  %v3917_v11 = vld [vmem:[%s5084_s3 + $0x340] ss:$16 sps:$4 sm:$0xff]  }
 0x101   : > { %2717 = vmatpush1.bf16.msra.mxu0 %v3824_v12  ;;  %2803 = vmatpush1.bf16.msra.mxu1 %v3827_v13  ;;  %v3920_v12 = vld [vmem:[%s5084_s3 + $0x348] ss:$16 sps:$4 sm:$0xff]   ;;  %v3925_v13 = vld [vmem:[%s5084_s3 + $0x364] ss:$16 sps:$4 sm:$0xff]  }
 0x102   : > { %2718 = vmatprep.subr.bf16.mxu0 %v3832_v14  ;;  %2804 = vmatprep.subr.bf16.mxu1 %v3835_v15  ;;  %v3928_v14 = vld [vmem:[%s5084_s3 + $0x36c] ss:$16 sps:$4 sm:$0xff]   ;;  %v3923_v15 = vld [vmem:[%s5084_s3 + $0x360] ss:$16 sps:$4 sm:$0xff]  }
 0x105   : > { %2719 = vmatpush1.bf16.msra.mxu0 %v3830_v16  ;;  %2805 = vmatpush1.bf16.msra.mxu1 %v3833_v18  ;;  %v3926_v16 = vld [vmem:[%s5084_s3 + $0x368] ss:$16 sps:$4 sm:$0xff]   ;;  %v3931_v18 = vld [vmem:[%s5084_s3 + $0x384] ss:$16 sps:$4 sm:$0xff]  }
 0x106   : > { %2720 = vmatprep.subr.bf16.mxu0 %v3838_v21  ;;  %2806 = vmatprep.subr.bf16.mxu1 %v3841_v22  ;;  %v3934_v21 = vld [vmem:[%s5084_s3 + $0x38c] ss:$16 sps:$4 sm:$0xff]   ;;  %v3929_v22 = vld [vmem:[%s5084_s3 + $0x380] ss:$16 sps:$4 sm:$0xff]  }
 0x109   : > { %2721 = vmatpush1.bf16.msra.mxu0 %v3836_v23  ;;  %2807 = vmatpush1.bf16.msra.mxu1 %v3839_v24  ;;  %v3932_v23 = vld [vmem:[%s5084_s3 + $0x388] ss:$16 sps:$4 sm:$0xff]   ;;  %v3937_v24 = vld [vmem:[%s5084_s3 + $0x3a4] ss:$16 sps:$4 sm:$0xff]  }
 0x10a   : > { %2722 = vmatprep.subr.bf16.mxu0 %v3844_v25  ;;  %2808 = vmatprep.subr.bf16.mxu1 %v3847_v26  ;;  %v3940_v25 = vld [vmem:[%s5084_s3 + $0x3ac] ss:$16 sps:$4 sm:$0xff]   ;;  %v3935_v26 = vld [vmem:[%s5084_s3 + $0x3a0] ss:$16 sps:$4 sm:$0xff]  }
 0x10d   : > { %2723 = vmatpush1.bf16.msra.mxu0 %v3842_v27  ;;  %2809 = vmatpush1.bf16.msra.mxu1 %v3845_v28  ;;  %v3938_v27 = vld [vmem:[%s5084_s3 + $0x3a8] ss:$16 sps:$4 sm:$0xff]   ;;  %v3943_v28 = vld [vmem:[%s5084_s3 + $0x3c4] ss:$16 sps:$4 sm:$0xff]  }
 0x10e   : > { %2724 = vmatprep.subr.bf16.mxu0 %v3850_v17  ;;  %2810 = vmatprep.subr.bf16.mxu1 %v3853_v29  ;;  %v3946_v17 = vld [vmem:[%s5084_s3 + $0x3cc] ss:$16 sps:$4 sm:$0xff]   ;;  %v3941_v29 = vld [vmem:[%s5084_s3 + $0x3c0] ss:$16 sps:$4 sm:$0xff]  }
 0x111   : > { %2725 = vmatpush1.bf16.msra.mxu0 %v3848_v30  ;;  %2811 = vmatpush1.bf16.msra.mxu1 %v3851_v31  ;;  %v3944_v30 = vld [vmem:[%s5084_s3 + $0x3c8] ss:$16 sps:$4 sm:$0xff]   ;;  %v3949_v31 = vld [vmem:[%s5084_s3 + $0x3e4] ss:$16 sps:$4 sm:$0xff]  }
 0x112   : > { %2737 = vmatprep.subr.bf16.mxu0 %v3859_v32  ;;  %2823 = vmatprep.subr.bf16.mxu1 %v3862_v33  ;;  %v3952_v32 = vld [vmem:[%s5084_s3 + $0x3ec] ss:$16 sps:$4 sm:$0xff]   ;;  %v3947_v33 = vld [vmem:[%s5084_s3 + $0x3e0] ss:$16 sps:$4 sm:$0xff]  }
 0x114   : > { %2727 = vmatmul.mubr.bf16.vlgmr.msra.gmra.mrb[4].mxu0 %v3854_v34  ;;  %2813 = vmatmul.mubr.bf16.vlgmr.msra.gmra.mrb[4].mxu1 %v3854_v34  ;;  %v3950_v34 = vld [vmem:[%s5084_s3 + $0x3e8] ss:$16 sps:$4 sm:$0xff]  }
 0x115   : > { %2738 = vmatpush1.bf16.msra.mxu0 %v3857_v19  ;;  %2824 = vmatpush1.bf16.msra.mxu1 %v3860_v35  ;;  %v3953_v19 = vld [vmem:[%s4583_s7 + $0x8] ss:$16 sps:$4 sm:$0xff]  }
 0x116   : > { %2739 = vmatprep.subr.bf16.mxu0 %v3865_v20  ;;  %2825 = vmatprep.subr.bf16.mxu1 %v3868_v36 }
 0x117   : > { %2769 = vmatprep.mubr.bf16.mxu0 %v3955_v37  ;;  %2855 = vmatprep.mubr.bf16.mxu1 %v3955_v37 }
 0x119   : > { %2740 = vmatpush1.bf16.msra.mxu0 %v3863_v38  ;;  %2826 = vmatpush1.bf16.msra.mxu1 %v3866_v39 }
 0x11a   : > { %2741 = vmatprep.subr.bf16.mxu0 %v3871_v40  ;;  %2827 = vmatprep.subr.bf16.mxu1 %v3874_v41 }
 0x11d   : > { %2742 = vmatpush1.bf16.msra.mxu0 %v3869_v42  ;;  %2828 = vmatpush1.bf16.msra.mxu1 %v3872_v43  ;;  %v5038_v42 = vsub.s32 0, %v4150_v44  ;;  %v5041_v43 = vsub.s32 2, %v4150_v44 }
 0x11e   : > { %2743 = vmatprep.subr.bf16.mxu0 %v3877_v45  ;;  %2829 = vmatprep.subr.bf16.mxu1 %v3880_v46  ;;  %v2866_v45 = vld [vmem:[%s5085_s4] sm:$0xf]  ;;  %v5047_v46 = vsub.s32 1, %v4150_v44 }
 0x121   : > { %2744 = vmatpush1.bf16.msra.mxu0 %v3875_v47  ;;  %2830 = vmatpush1.bf16.msra.mxu1 %v3878_v48  ;;  %v5050_v47 = vsub.s32 3, %v4150_v44  ;;  %v2896_v48 = vld [vmem:[%s5086_s5] sm:$0xf]  ;;  %v2875_v44 = vrot.slane %v2866_v45, %v5047_v46 }
 0x122   : > { %2745 = vmatprep.subr.bf16.mxu0 %v3883_v49  ;;  %2831 = vmatprep.subr.bf16.mxu1 %v3886_v50 }
 0x125   : > { %2746 = vmatpush1.bf16.msra.mxu0 %v3881_v51  ;;  %2832 = vmatpush1.bf16.msra.mxu1 %v3884_v52  ;;  %v2871_v51 = vrot.slane %v2866_v45, %v5038_v42  ;;  %v2879_v52 = vrot.slane %v2866_v45, %v5041_v43 }
 0x126   : > { %2747 = vmatprep.subr.bf16.mxu0 %v3889_v53  ;;  %2833 = vmatprep.subr.bf16.mxu1 %v3892_v54 }
 0x129   : > { %2748 = vmatpush1.bf16.msra.mxu0 %v3887_v55  ;;  %2834 = vmatpush1.bf16.msra.mxu1 %v3890_v56 }
 0x12a   : > { %2749 = vmatprep.subr.bf16.mxu0 %v3895_v57  ;;  %2835 = vmatprep.subr.bf16.mxu1 %v3898_v58  ;;  %v2883_v57 = vrot.slane %v2866_v45, %v5050_v47 }
 0x12d   : > { %2750 = vmatpush1.bf16.msra.mxu0 %v3893_v59  ;;  %2836 = vmatpush1.bf16.msra.mxu1 %v3896_v60  ;;  %v2901_v59 = vrot.slane %v2896_v48, %v5038_v42 }
 0x12e   : > { %2751 = vmatprep.subr.bf16.mxu0 %v3901_v61  ;;  %2837 = vmatprep.subr.bf16.mxu1 %v3904_v62  ;;  %v2909_v61 = vrot.slane %v2896_v48, %v5041_v43 }
 0x131   : > { %2752 = vmatpush1.bf16.msra.mxu0 %v3899_v63  ;;  %2838 = vmatpush1.bf16.msra.mxu1 %v3902_v0 }
 0x132   : > { %2753 = vmatprep.subr.bf16.mxu0 %v3907_v1  ;;  %2839 = vmatprep.subr.bf16.mxu1 %v3910_v2  ;;  %v2905_v1 = vrot.slane %v2896_v48, %v5047_v46 }
 0x135   : > { %2754 = vmatpush1.bf16.msra.mxu0 %v3905_v3  ;;  %2840 = vmatpush1.bf16.msra.mxu1 %v3908_v4  ;;  %v2913_v3 = vrot.slane %v2896_v48, %v5050_v47 }
 0x136   : > { %2755 = vmatprep.subr.bf16.mxu0 %v3913_v5  ;;  %2841 = vmatprep.subr.bf16.mxu1 %v3916_v6 }
 0x139   : > { %2756 = vmatpush1.bf16.msra.mxu0 %v3911_v7  ;;  %2842 = vmatpush1.bf16.msra.mxu1 %v3914_v8 }
 0x13a   : > { %2757 = vmatprep.subr.bf16.mxu0 %v3919_v9  ;;  %2843 = vmatprep.subr.bf16.mxu1 %v3922_v10 }
 0x13d   : > { %2758 = vmatpush1.bf16.msra.mxu0 %v3917_v11  ;;  %2844 = vmatpush1.bf16.msra.mxu1 %v3920_v12 }
 0x13e   : > { %2759 = vmatprep.subr.bf16.mxu0 %v3925_v13  ;;  %2845 = vmatprep.subr.bf16.mxu1 %v3928_v14 }
 0x141   : > { %2760 = vmatpush1.bf16.msra.mxu0 %v3923_v15  ;;  %2846 = vmatpush1.bf16.msra.mxu1 %v3926_v16 }
 0x142   : > { %2761 = vmatprep.subr.bf16.mxu0 %v3931_v18  ;;  %2847 = vmatprep.subr.bf16.mxu1 %v3934_v21 }
 0x145   : > { %2762 = vmatpush1.bf16.msra.mxu0 %v3929_v22  ;;  %2848 = vmatpush1.bf16.msra.mxu1 %v3932_v23 }
 0x146   : > { %2763 = vmatprep.subr.bf16.mxu0 %v3937_v24  ;;  %2849 = vmatprep.subr.bf16.mxu1 %v3940_v25 }
 0x149   : > { %2764 = vmatpush1.bf16.msra.mxu0 %v3935_v26  ;;  %2850 = vmatpush1.bf16.msra.mxu1 %v3938_v27 }
 0x14a   : > { %2765 = vmatprep.subr.bf16.mxu0 %v3943_v28  ;;  %2851 = vmatprep.subr.bf16.mxu1 %v3946_v17 }
 0x14d   : > { %2766 = vmatpush1.bf16.msra.mxu0 %v3941_v29  ;;  %2852 = vmatpush1.bf16.msra.mxu1 %v3944_v30 }
 0x14e   : > { %2767 = vmatprep.subr.bf16.mxu0 %v3949_v31  ;;  %2853 = vmatprep.subr.bf16.mxu1 %v3952_v32 }
 0x151   : > { %2768 = vmatpush1.bf16.msra.mxu0 %v3947_v33  ;;  %2854 = vmatpush1.bf16.msra.mxu1 %v3950_v34 }
 0x154   : > { %2770 = vmatmul.mubr.bf16.vlgmr.msra.gmra.mrb[4].mxu0 %v3953_v19  ;;  %2856 = vmatmul.mubr.bf16.vlgmr.msra.gmra.mrb[4].mxu1 %v3953_v19 }
 0x1a7   : > { %v1715_v35 = vpop.f32.mrb[0].mxu0  ;;  %v1879_v20 = vpop.f32.mrb[0].mxu1 }
 0x1a8   : > { %v1717_v36 = vpop.f32.mrb[1].mxu0  ;;  %v1881_v37 = vpop.f32.mrb[1].mxu1  ;;  %v2021_v49 = vrot.slane %v1715_v35, %v5038_v42  ;;  %v2029_v50 = vrot.slane %v1879_v20, %v5038_v42 }
 0x1a9   : > { %v1719_v38 = vpop.f32.mrb[2].mxu0  ;;  %v1883_v39 = vpop.f32.mrb[2].mxu1  ;;  %v2025_v53 = vrot.slane %v1717_v36, %v5038_v42  ;;  %v2033_v54 = vrot.slane %v1881_v37, %v5038_v42 }
 0x1aa   : > { %v1720_v40 = vpop.f32.mrb[3].mxu0  ;;  %v1884_v41 = vpop.f32.mrb[3].mxu1 }
 0x227   : > { %v2771_v55 = vpop.f32.mrb[4].mxu0  ;;  %v2857_v56 = vpop.f32.mrb[4].mxu1 }
 0x228   : > { %v3412_v58 = vadd.f32 %v2771_v55, %v2021_v49  ;;  %v3416_v60 = vadd.f32 %v2857_v56, %v2029_v50  ;;  %v2773_v62 = vpop.f32.mrb[5].mxu0  ;;  %v2859_v63 = vpop.f32.mrb[5].mxu1 }
 0x229   : > { %v3413_v0 = vadd.f32 %v2773_v62, %v2025_v53  ;;  %v3417_v2 = vadd.f32 %v2859_v63, %v2033_v54  ;;  %v2775_v4 = vpop.f32.mrb[6].mxu0  ;;  %v2861_v5 = vpop.f32.mrb[6].mxu1 }
 0x22a   : > { %v2888_v6 = vmul.f32 %v3412_v58, %v2871_v51  ;;  %v2890_v7 = vmul.f32 %v3416_v60, %v2879_v52  ;;  %v3414_v8 = vadd.f32 %v2775_v4, %v2021_v49  ;;  %v3418_v9 = vadd.f32 %v2861_v5, %v2029_v50  ;;  %v2777_v10 = vpop.f32.mrb[7].mxu0  ;;  %v2863_v11 = vpop.f32.mrb[7].mxu1  ;;  %v2966_v60 = vld [vmem:[%s5087_s6] sm:$0xf] }
 0x22b   : > { %v2889_v12 = vmul.f32 %v3413_v0, %v2875_v44  ;;  %v2891_v13 = vmul.f32 %v3417_v2, %v2883_v57  ;;  %v3415_v14 = vadd.f32 %v2777_v10, %v2025_v53  ;;  %v3419_v15 = vadd.f32 %v2863_v11, %v2033_v54 }
 0x22c   : > { %v2918_v16 = vadd.f32 %v2901_v59, %v2888_v6  ;;  %v2920_v18 = vadd.f32 %v2909_v61, %v2890_v7  ;;  %v2892_v21 = vmul.f32 %v3414_v8, %v2871_v51  ;;  %v2894_v22 = vmul.f32 %v3418_v9, %v2879_v52 }
 0x22d   : > { %v2919_v23 = vadd.f32 %v2905_v1, %v2889_v12  ;;  %v2921_v24 = vadd.f32 %v2913_v3, %v2891_v13  ;;  %v2893_v25 = vmul.f32 %v3415_v14, %v2875_v44  ;;  %v2895_v26 = vmul.f32 %v3419_v15, %v2883_v57 }
 0x22e   : > { %v2922_v27 = vadd.f32 %v2901_v59, %v2892_v21  ;;  %v2924_v28 = vadd.f32 %v2909_v61, %v2894_v22  ;;  %v2926_v30 = vmax.f32 %v2918_v16, 0.0  ;;  %v2928_v31 = vmax.f32 %v2920_v18, 0.0 }
 0x22f   : > { %v2923_v17 = vadd.f32 %v2905_v1, %v2893_v25  ;;  %v2925_v29 = vadd.f32 %v2913_v3, %v2895_v26  ;;  %v2927_v34 = vmax.f32 %v2919_v23, 0.0  ;;  %v2929_v19 = vmax.f32 %v2921_v24, 0.0 }
 0x230   : > { %v2930_v32 = vmax.f32 %v2922_v27, 0.0  ;;  %v2932_v33 = vmax.f32 %v2924_v28, 0.0  ;;  %v2971_v3 = vrot.slane %v2966_v60, %v5038_v42  ;;  %v2975_v6 = vrot.slane %v2966_v60, %v5047_v46 }
 0x231   : > { %v2931_v35 = vmax.f32 %v2923_v17, 0.0  ;;  %v2933_v20 = vmax.f32 %v2925_v29, 0.0  ;;  %v2979_v7 = vrot.slane %v2966_v60, %v5041_v43  ;;  %v2983_v12 = vrot.slane %v2966_v60, %v5050_v47  ;;  %v3002_v43 = vld [vmem:[#allocation2] sm:$0x1] }
 0x232   : > { %v2934_v36 = vadd.f32 %v2930_v32, %v2926_v30  ;;  %v2948_v37 = vadd.f32 %v2932_v33, %v2928_v31 }
 0x233   : > { %v2941_v38 = vadd.f32 %v2931_v35, %v2927_v34  ;;  %v2955_v39 = vadd.f32 %v2933_v20, %v2929_v19 }
 0x234   : > { %v2935_v40 = vrot.slane %v2934_v36, 4  ;;  %v2949_v41 = vrot.slane %v2948_v37, 4 }
 0x235   : > { %v2942_v45 = vrot.slane %v2941_v38, 4  ;;  %v2956_v48 = vrot.slane %v2955_v39, 4 }
 0x236   : > { %v2936_v49 = vadd.f32 %v2935_v40, %v2934_v36  ;;  %v2950_v50 = vadd.f32 %v2949_v41, %v2948_v37 }
 0x237   : > { %v2943_v51 = vadd.f32 %v2942_v45, %v2941_v38  ;;  %v2957_v52 = vadd.f32 %v2956_v48, %v2955_v39 }
 0x238   : > { %v2937_v53 = vrot.slane %v2936_v49, 2  ;;  %v2951_v54 = vrot.slane %v2950_v50, 2 }
 0x239   : > { %v2944_v55 = vrot.slane %v2943_v51, 2  ;;  %v2958_v56 = vrot.slane %v2957_v52, 2 }
 0x23a   : > { %v2938_v44 = vadd.f32 %v2937_v53, %v2936_v49  ;;  %v2952_v57 = vadd.f32 %v2951_v54, %v2950_v50 }
 0x23b   : > { %v2945_v58 = vadd.f32 %v2944_v55, %v2943_v51  ;;  %v2959_v59 = vadd.f32 %v2958_v56, %v2957_v52 }
 0x23c   : > { %v2939_v61 = vrot.slane %v2938_v44, 1  ;;  %v2953_v62 = vrot.slane %v2952_v57, 1 }
 0x23d   : > { %v2946_v63 = vrot.slane %v2945_v58, 1  ;;  %v2960_v0 = vrot.slane %v2959_v59, 1 }
 0x23e   : > { %v2940_v1 = vadd.f32 %v2939_v61, %v2938_v44  ;;  %v2954_v2 = vadd.f32 %v2953_v62, %v2952_v57 }
 0x23f   : > { %v2947_v4 = vadd.f32 %v2946_v63, %v2945_v58  ;;  %v2961_v5 = vadd.f32 %v2960_v0, %v2959_v59 }
 0x240   : > { %v2962_v8 = vmul.f32 0.0625, %v2940_v1  ;;  %v2964_v9 = vmul.f32 0.0625, %v2954_v2 }
 0x241   : > { %v2963_v10 = vmul.f32 0.0625, %v2947_v4  ;;  %v2965_v11 = vmul.f32 0.0625, %v2961_v5 }
 0x242   : > { %v2988_v13 = vmul.f32 %v2971_v3, %v2962_v8  ;;  %v2990_v15 = vmul.f32 %v2979_v7, %v2964_v9 }
 0x243   : > { %v2989_v14 = vmul.f32 %v2975_v6, %v2963_v10  ;;  %v2991_v18 = vmul.f32 %v2983_v12, %v2965_v11 }
 0x244   : > { %v2993_v16 = vsel %vm2992_vm1, %v2988_v13, 0.0  ;;  %v2996_v22 = vsel %vm2992_vm1, %v2990_v15, 0.0 }
 0x245   : > { %v2994_v42 = vsel %vm2992_vm1, %v2989_v14, 0.0  ;;  %v2998_v46 = vsel %vm2992_vm1, %v2991_v18, 0.0 }
 0x246   : > { %v2995_v21 = vadd.f32 %v2994_v42, %v2993_v16 }
 0x248   : > { %v2997_v23 = vadd.f32 %v2996_v22, %v2995_v21 }
 0x24a   : > { %v2999_v24 = vadd.f32 %v2998_v46, %v2997_v23 }
 0x24c   : > { %3000 = vadd.xlane.f32.xlu0 %v2999_v24 }
 0x2d9   : > { %v3001_v25 = vpop.xlane.xlu0 %3000 }
 0x2da   : > { %v3003_v26 = vadd.f32 %v3002_v43, %v3001_v25 }
 0x2dc   : > { %v3408_v27 = vmul.f32 -1.442695, %v3003_v26 }
 0x2de   : > { %3956 = vpow2.f32 %v3408_v27 }
 0x2e8   : > { %v3957_v47 = vpop.eup %3956 }
 0x2e9   : > { %v3007_v28 = vadd.f32 1.0, %v3957_v47 }
 0x2eb   : > { %3958 = vrcp.f32 %v3007_v28 }
 0x2f5   : > { %v3959_v17 = vpop.eup %3958 }
 0x2f6   : > { %3011 = vst.msk [vmem:[%s320_s14] sm:$0x1] %vm3010_vm2, %v3959_v17 }
 0x2f7 PF: > { %s20_s29 = sadd.s32 1, %s3966_s29  }
 0x2f8   : > { %p17_p4 = scmp.ge.s32.totalorder %s20_s29, 4  }
 0x2fa   :  { %19 = sbr.rel (!%p17_p4) target bundleno = 3 (0x3), region = 85 }

</bundles_post_ra>
